<compile_context>
chip_gen: v6e
topology: v6e:2x2x1
jax: 0.10.0
libtpu: 0.0.40
codegen_flags: <defaults>
</compile_context>

<pallas_src>
import jax
import jax.numpy as jnp
from jax.experimental import pallas as pl
from jax.experimental.pallas import tpu as pltpu


def _round_up(n, m):
    return ((n + m - 1) // m) * m


def _make_mlp_kernel(num_layers, pop_block, compute_dtype):
    """Kernel for one population block (Pb members per grid step).

    Ref order: x, W0, b0, W1, b1, ..., W_{L-1}, b_{L-1}, out
    Each ref carries a leading block dim of size Pb (the population slice);
    the last two dims are the full (unpadded) array dims.
    ReLU after every layer except the last, Sigmoid after the last.
    """

    def kernel(*refs):
        x_ref = refs[0]
        param_refs = refs[1:1 + 2 * num_layers]
        o_ref = refs[-1]

        # Unrolled loop over the Pb members in this block: tiny per-member
        # matmuls, everything stays in vregs between layers.
        for m in range(pop_block):
            h = x_ref[m].astype(compute_dtype)                 # (B, D0)
            for i in range(num_layers):
                w = param_refs[2 * i][m]                       # (Din, Dout) compute_dtype
                b = param_refs[2 * i + 1][m]                   # (1, Dout)   f32 -> broadcasts
                # MXU matmul with f32 accumulation; bias / activations in f32.
                h = jnp.dot(h, w, preferred_element_type=jnp.float32) + b
                if i < num_layers - 1:
                    h = jnp.maximum(h, 0.0).astype(compute_dtype)   # nn.ReLU
                else:
                    h = jax.nn.sigmoid(h)                           # nn.Sigmoid (f32, EUP)
            o_ref[m] = h.astype(o_ref.dtype)

    return kernel


def net_forward_population(x, params, *, compute_dtype=jnp.bfloat16, pop_block=8):
    """Evaluate a whole population of MLPs in one Pallas kernel.

    x:      (P, B, state_dim) float32 — per-individual input batch
    params: list of (W, b) with W (P, in, out) and b (P, 1, out), float32
    compute_dtype: dtype of matmul operands (bf16 default, or f32); the
                   accumulate, bias-add and activations stay in f32.
    pop_block: population members processed per grid step.
    returns (P, B, action_dim) float32
    """
    P, B, state_dim = x.shape
    num_layers = len(params)
    dims = [state_dim] + [w.shape[2] for w, _ in params]

    Pb = max(1, min(pop_block, P))
    Ppad = _round_up(P, Pb)

    def pad_pop(a):
        # Only the population axis is ever padded (to a multiple of Pb);
        # feature/batch dims stay at their true sizes.
        if Ppad == P:
            return a
        return jnp.pad(a, ((0, Ppad - P),) + ((0, 0),) * (a.ndim - 1))

    flat = [pad_pop(x.astype(compute_dtype))]
    for (w, b) in params:
        flat.append(pad_pop(w.astype(compute_dtype)))       # matmul operand dtype
        flat.append(pad_pop(b.astype(jnp.float32)))         # bias stays f32

    kernel = _make_mlp_kernel(num_layers, Pb, compute_dtype)

    # Block only the population axis; last two block dims == full array dims,
    # which satisfies the (8,128) BlockSpec rule without any lane padding.
    in_specs = [
        pl.BlockSpec((Pb,) + a.shape[1:], lambda p: (p, 0, 0)) for a in flat
    ]
    out_specs = pl.BlockSpec((Pb, B, dims[-1]), lambda p: (p, 0, 0))

    # Cost estimate from the REAL dims / the bytes actually DMA'd.
    flops = 2 * P * B * sum(dims[i] * dims[i + 1] for i in range(num_layers))
    bytes_accessed = (
        sum(int(a.size) * a.dtype.itemsize for a in flat)
        + Ppad * B * dims[-1] * 4
    )
    cost = pl.CostEstimate(
        flops=flops,
        transcendentals=P * B * dims[-1],                    # sigmoid exp
        bytes_accessed=bytes_accessed,
    )

    out = pl.pallas_call(
        kernel,
        out_shape=jax.ShapeDtypeStruct((Ppad, B, dims[-1]), jnp.float32),
        grid=(Ppad // Pb,),
        in_specs=in_specs,
        out_specs=out_specs,
        compiler_params=pltpu.CompilerParams(
            # Population-block axis is embarrassingly parallel: shardable
            # across v7x's 2 TensorCores; no effect on single-TC v5e/v6e.
            dimension_semantics=("parallel",),
        ),
        cost_estimate=cost,
    )(*flat)

    return out[:P] if Ppad != P else out


def net_forward(x, params, **kwargs):
    """Single-network forward, exactly matching the PyTorch Net.forward.

    x:      (B, state_dim) float32
    params: list of (W, b) with W (in, out) and b (1, out), float32
    returns (B, action_dim) float32
    """
    xp = x[None]                                             # population of 1
    stacked = [(w[None], b[None]) for w, b in params]
    return net_forward_population(xp, stacked, **kwargs)[0]


def init_population_params(key, pop, state_dim, action_dim, hidden_dims):
    """Deterministic init mimicking torch.nn.Linear default, stacked over a
    population: U(-1/sqrt(in), 1/sqrt(in)) for W and b."""
    dims = [state_dim] + list(hidden_dims) + [action_dim]
    params = []
    for i in range(len(dims) - 1):
        fan_in, fan_out = dims[i], dims[i + 1]
        key, kw, kb = jax.random.split(key, 3)
        bound = 1.0 / jnp.sqrt(jnp.float32(fan_in))
        w = jax.random.uniform(kw, (pop, fan_in, fan_out), jnp.float32, -bound, bound)
        b = jax.random.uniform(kb, (pop, 1, fan_out), jnp.float32, -bound, bound)
        params.append((w, b))
    return params


def reference_forward(x, params):
    """Pure-JAX reference (same math) over the population, for sanity checks."""
    h = x                                                    # (P, B, D)
    n = len(params)
    for i, (w, b) in enumerate(params):
        h = jnp.einsum("pbi,pio->pbo", h, w) + b
        h = jnp.maximum(h, 0.0) if i < n - 1 else jax.nn.sigmoid(h)
    return h


if __name__ == "__main__":
    state_dim = 8
    action_dim = 4
    hidden_dims = [32, 32]
    batch = 2
    pop = 16                                                 # population members per call

    key = jax.random.PRNGKey(0)
    key, kx = jax.random.split(key)
    x = jax.random.normal(kx, (pop, batch, state_dim), jnp.float32)
    params = init_population_params(key, pop, state_dim, action_dim, hidden_dims)

    ref = reference_forward(x, params)

    # f32 matmul-operand path: matches the reference tightly.
    out_f32 = jax.block_until_ready(
        net_forward_population(x, params, compute_dtype=jnp.float32)
    )
    assert out_f32.shape == (pop, batch, action_dim)
    assert jnp.allclose(out_f32, ref, atol=1e-5, rtol=1e-5), "f32 mismatch vs reference"

    # Default bf16 matmul-operand path (MXU-native); f32 accumulate + f32
    # bias/ReLU/Sigmoid, so only operand rounding differs -> loose tolerance.
    out_bf16 = jax.block_until_ready(net_forward_population(x, params))
    assert out_bf16.shape == (pop, batch, action_dim)
    assert jnp.allclose(out_bf16, ref, atol=2e-2, rtol=2e-2), "bf16 mismatch vs reference"

    # Single-network path (the literal Net.forward semantics).
    single_params = [(w[0], b[0]) for w, b in params]
    out_single = jax.block_until_ready(net_forward(x[0], single_params))
    assert out_single.shape == (batch, action_dim)
    assert jnp.allclose(out_single, ref[0], atol=2e-2, rtol=2e-2), "single-net mismatch"

    print("KERNEL_OK")
</pallas_src>

<mosaic_0001>
module attributes {stable_mosaic.version = 11 : i64} {
  func.func @kernel(%arg0: i32, %arg1: memref<8x2x8xf32, #tpu.memory_space<vmem>>, %arg2: memref<8x8x32xf32, #tpu.memory_space<vmem>>, %arg3: memref<8x1x32xf32, #tpu.memory_space<vmem>>, %arg4: memref<8x32x32xf32, #tpu.memory_space<vmem>>, %arg5: memref<8x1x32xf32, #tpu.memory_space<vmem>>, %arg6: memref<8x32x4xf32, #tpu.memory_space<vmem>>, %arg7: memref<8x1x4xf32, #tpu.memory_space<vmem>>, %arg8: memref<8x2x4xf32, #tpu.memory_space<vmem>>) attributes {dimension_semantics = [#tpu.dimension_semantics<parallel>], iteration_bounds = array<i64: 2>, scalar_prefetch = 0 : i64, scratch_operands = 0 : i64, tpu.core_type = #tpu.core_type<tc>, window_params = [{transform_indices = @transform_0, window_bounds = array<i64: 8, 2, 8>}, {transform_indices = @transform_1, window_bounds = array<i64: 8, 8, 32>}, {transform_indices = @transform_2, window_bounds = array<i64: 8, 1, 32>}, {transform_indices = @transform_3, window_bounds = array<i64: 8, 32, 32>}, {transform_indices = @transform_4, window_bounds = array<i64: 8, 1, 32>}, {transform_indices = @transform_5, window_bounds = array<i64: 8, 32, 4>}, {transform_indices = @transform_6, window_bounds = array<i64: 8, 1, 4>}, {transform_indices = @transform_7, window_bounds = array<i64: 8, 2, 4>}]} {
    %c0 = arith.constant 0 : index
    %c0_0 = arith.constant 0 : index
    %c0_1 = arith.constant 0 : index
    %0 = vector.load %arg1[%c0, %c0_0, %c0_1] : memref<8x2x8xf32, #tpu.memory_space<vmem>>, vector<1x2x8xf32>
    %1 = vector.shape_cast %0 : vector<1x2x8xf32> to vector<2x8xf32>
    %c0_2 = arith.constant 0 : index
    %c0_3 = arith.constant 0 : index
    %c0_4 = arith.constant 0 : index
    %2 = vector.load %arg2[%c0_2, %c0_3, %c0_4] : memref<8x8x32xf32, #tpu.memory_space<vmem>>, vector<1x8x32xf32>
    %3 = vector.shape_cast %2 : vector<1x8x32xf32> to vector<8x32xf32>
    %c0_5 = arith.constant 0 : index
    %c0_6 = arith.constant 0 : index
    %c0_7 = arith.constant 0 : index
    %4 = vector.load %arg3[%c0_5, %c0_6, %c0_7] : memref<8x1x32xf32, #tpu.memory_space<vmem>>, vector<1x1x32xf32>
    %5 = vector.shape_cast %4 : vector<1x1x32xf32> to vector<1x32xf32>
    %cst = arith.constant dense<0.000000e+00> : vector<2x32xf32>
    %6 = tpu.matmul %1, %3, %cst {dimension_numbers = #tpu.dot_dimension_numbers<[1], [0], [0], [1], [0, 0, 1, 1], [], []>} : vector<2x8xf32>, vector<8x32xf32>, vector<2x32xf32> -> vector<2x32xf32>
    %7 = vector.broadcast %5 : vector<1x32xf32> to vector<2x32xf32>
    %8 = arith.addf %6, %7 : vector<2x32xf32>
    %cst_8 = arith.constant 0.000000e+00 : f32
    %9 = vector.broadcast %cst_8 : f32 to vector<2x32xf32>
    %10 = arith.maximumf %8, %9 : vector<2x32xf32>
    %c0_9 = arith.constant 0 : index
    %c0_10 = arith.constant 0 : index
    %c0_11 = arith.constant 0 : index
    %11 = vector.load %arg4[%c0_9, %c0_10, %c0_11] : memref<8x32x32xf32, #tpu.memory_space<vmem>>, vector<1x32x32xf32>
    %12 = vector.shape_cast %11 : vector<1x32x32xf32> to vector<32x32xf32>
    %c0_12 = arith.constant 0 : index
    %c0_13 = arith.constant 0 : index
    %c0_14 = arith.constant 0 : index
    %13 = vector.load %arg5[%c0_12, %c0_13, %c0_14] : memref<8x1x32xf32, #tpu.memory_space<vmem>>, vector<1x1x32xf32>
    %14 = vector.shape_cast %13 : vector<1x1x32xf32> to vector<1x32xf32>
    %cst_15 = arith.constant dense<0.000000e+00> : vector<2x32xf32>
    %15 = tpu.matmul %10, %12, %cst_15 {dimension_numbers = #tpu.dot_dimension_numbers<[1], [0], [0], [1], [0, 0, 1, 1], [], []>} : vector<2x32xf32>, vector<32x32xf32>, vector<2x32xf32> -> vector<2x32xf32>
    %16 = vector.broadcast %14 : vector<1x32xf32> to vector<2x32xf32>
    %17 = arith.addf %15, %16 : vector<2x32xf32>
    %cst_16 = arith.constant 0.000000e+00 : f32
    %18 = vector.broadcast %cst_16 : f32 to vector<2x32xf32>
    %19 = arith.maximumf %17, %18 : vector<2x32xf32>
    %c0_17 = arith.constant 0 : index
    %c0_18 = arith.constant 0 : index
    %c0_19 = arith.constant 0 : index
    %20 = vector.load %arg6[%c0_17, %c0_18, %c0_19] : memref<8x32x4xf32, #tpu.memory_space<vmem>>, vector<1x32x4xf32>
    %21 = vector.shape_cast %20 : vector<1x32x4xf32> to vector<32x4xf32>
    %c0_20 = arith.constant 0 : index
    %c0_21 = arith.constant 0 : index
    %c0_22 = arith.constant 0 : index
    %22 = vector.load %arg7[%c0_20, %c0_21, %c0_22] : memref<8x1x4xf32, #tpu.memory_space<vmem>>, vector<1x1x4xf32>
    %23 = vector.shape_cast %22 : vector<1x1x4xf32> to vector<1x4xf32>
    %cst_23 = arith.constant dense<0.000000e+00> : vector<2x4xf32>
    %24 = tpu.matmul %19, %21, %cst_23 {dimension_numbers = #tpu.dot_dimension_numbers<[1], [0], [0], [1], [0, 0, 1, 1], [], []>} : vector<2x32xf32>, vector<32x4xf32>, vector<2x4xf32> -> vector<2x4xf32>
    %25 = vector.broadcast %23 : vector<1x4xf32> to vector<2x4xf32>
    %26 = arith.addf %24, %25 : vector<2x4xf32>
    %27 = arith.negf %26 : vector<2x4xf32>
    %28 = math.exp %27 : vector<2x4xf32>
    %cst_24 = arith.constant 1.000000e+00 : f32
    %29 = vector.broadcast %cst_24 : f32 to vector<2x4xf32>
    %30 = arith.addf %29, %28 : vector<2x4xf32>
    %31 = arith.divf %29, %30 : vector<2x4xf32>
    %c0_25 = arith.constant 0 : index
    %c0_26 = arith.constant 0 : index
    %c0_27 = arith.constant 0 : index
    %32 = vector.load %arg8[%c0_25, %c0_26, %c0_27] : memref<8x2x4xf32, #tpu.memory_space<vmem>>, vector<1x2x4xf32>
    %33 = vector.shape_cast %32 : vector<1x2x4xf32> to vector<2x4xf32>
    %34 = vector.shape_cast %31 : vector<2x4xf32> to vector<1x2x4xf32>
    tpu.vector_store %arg8[%c0_25, %c0_26, %c0_27], %34 {strides = array<i32>} : memref<8x2x4xf32, #tpu.memory_space<vmem>>, vector<1x2x4xf32>,
    %c1 = arith.constant 1 : index
    %c0_28 = arith.constant 0 : index
    %c0_29 = arith.constant 0 : index
    %35 = vector.load %arg1[%c1, %c0_28, %c0_29] : memref<8x2x8xf32, #tpu.memory_space<vmem>>, vector<1x2x8xf32>
    %36 = vector.shape_cast %35 : vector<1x2x8xf32> to vector<2x8xf32>
    %c1_30 = arith.constant 1 : index
    %c0_31 = arith.constant 0 : index
    %c0_32 = arith.constant 0 : index
    %37 = vector.load %arg2[%c1_30, %c0_31, %c0_32] : memref<8x8x32xf32, #tpu.memory_space<vmem>>, vector<1x8x32xf32>
    %38 = vector.shape_cast %37 : vector<1x8x32xf32> to vector<8x32xf32>
    %c1_33 = arith.constant 1 : index
    %c0_34 = arith.constant 0 : index
    %c0_35 = arith.constant 0 : index
    %39 = vector.load %arg3[%c1_33, %c0_34, %c0_35] : memref<8x1x32xf32, #tpu.memory_space<vmem>>, vector<1x1x32xf32>
    %40 = vector.shape_cast %39 : vector<1x1x32xf32> to vector<1x32xf32>
    %cst_36 = arith.constant dense<0.000000e+00> : vector<2x32xf32>
    %41 = tpu.matmul %36, %38, %cst_36 {dimension_numbers = #tpu.dot_dimension_numbers<[1], [0], [0], [1], [0, 0, 1, 1], [], []>} : vector<2x8xf32>, vector<8x32xf32>, vector<2x32xf32> -> vector<2x32xf32>
    %42 = vector.broadcast %40 : vector<1x32xf32> to vector<2x32xf32>
    %43 = arith.addf %41, %42 : vector<2x32xf32>
    %cst_37 = arith.constant 0.000000e+00 : f32
    %44 = vector.broadcast %cst_37 : f32 to vector<2x32xf32>
    %45 = arith.maximumf %43, %44 : vector<2x32xf32>
    %c1_38 = arith.constant 1 : index
    %c0_39 = arith.constant 0 : index
    %c0_40 = arith.constant 0 : index
    %46 = vector.load %arg4[%c1_38, %c0_39, %c0_40] : memref<8x32x32xf32, #tpu.memory_space<vmem>>, vector<1x32x32xf32>
    %47 = vector.shape_cast %46 : vector<1x32x32xf32> to vector<32x32xf32>
    %c1_41 = arith.constant 1 : index
    %c0_42 = arith.constant 0 : index
    %c0_43 = arith.constant 0 : index
    %48 = vector.load %arg5[%c1_41, %c0_42, %c0_43] : memref<8x1x32xf32, #tpu.memory_space<vmem>>, vector<1x1x32xf32>
    %49 = vector.shape_cast %48 : vector<1x1x32xf32> to vector<1x32xf32>
    %cst_44 = arith.constant dense<0.000000e+00> : vector<2x32xf32>
    %50 = tpu.matmul %45, %47, %cst_44 {dimension_numbers = #tpu.dot_dimension_numbers<[1], [0], [0], [1], [0, 0, 1, 1], [], []>} : vector<2x32xf32>, vector<32x32xf32>, vector<2x32xf32> -> vector<2x32xf32>
    %51 = vector.broadcast %49 : vector<1x32xf32> to vector<2x32xf32>
    %52 = arith.addf %50, %51 : vector<2x32xf32>
    %cst_45 = arith.constant 0.000000e+00 : f32
    %53 = vector.broadcast %cst_45 : f32 to vector<2x32xf32>
    %54 = arith.maximumf %52, %53 : vector<2x32xf32>
    %c1_46 = arith.constant 1 : index
    %c0_47 = arith.constant 0 : index
    %c0_48 = arith.constant 0 : index
    %55 = vector.load %arg6[%c1_46, %c0_47, %c0_48] : memref<8x32x4xf32, #tpu.memory_space<vmem>>, vector<1x32x4xf32>
    %56 = vector.shape_cast %55 : vector<1x32x4xf32> to vector<32x4xf32>
    %c1_49 = arith.constant 1 : index
    %c0_50 = arith.constant 0 : index
    %c0_51 = arith.constant 0 : index
    %57 = vector.load %arg7[%c1_49, %c0_50, %c0_51] : memref<8x1x4xf32, #tpu.memory_space<vmem>>, vector<1x1x4xf32>
    %58 = vector.shape_cast %57 : vector<1x1x4xf32> to vector<1x4xf32>
    %cst_52 = arith.constant dense<0.000000e+00> : vector<2x4xf32>
    %59 = tpu.matmul %54, %56, %cst_52 {dimension_numbers = #tpu.dot_dimension_numbers<[1], [0], [0], [1], [0, 0, 1, 1], [], []>} : vector<2x32xf32>, vector<32x4xf32>, vector<2x4xf32> -> vector<2x4xf32>
    %60 = vector.broadcast %58 : vector<1x4xf32> to vector<2x4xf32>
    %61 = arith.addf %59, %60 : vector<2x4xf32>
    %62 = arith.negf %61 : vector<2x4xf32>
    %63 = math.exp %62 : vector<2x4xf32>
    %cst_53 = arith.constant 1.000000e+00 : f32
    %64 = vector.broadcast %cst_53 : f32 to vector<2x4xf32>
    %65 = arith.addf %64, %63 : vector<2x4xf32>
    %66 = arith.divf %64, %65 : vector<2x4xf32>
    %c1_54 = arith.constant 1 : index
    %c0_55 = arith.constant 0 : index
    %c0_56 = arith.constant 0 : index
    %67 = vector.load %arg8[%c1_54, %c0_55, %c0_56] : memref<8x2x4xf32, #tpu.memory_space<vmem>>, vector<1x2x4xf32>
    %68 = vector.shape_cast %67 : vector<1x2x4xf32> to vector<2x4xf32>
    %69 = vector.shape_cast %66 : vector<2x4xf32> to vector<1x2x4xf32>
    tpu.vector_store %arg8[%c1_54, %c0_55, %c0_56], %69 {strides = array<i32>} : memref<8x2x4xf32, #tpu.memory_space<vmem>>, vector<1x2x4xf32>,
    %c2 = arith.constant 2 : index
    %c0_57 = arith.constant 0 : index
    %c0_58 = arith.constant 0 : index
    %70 = vector.load %arg1[%c2, %c0_57, %c0_58] : memref<8x2x8xf32, #tpu.memory_space<vmem>>, vector<1x2x8xf32>
    %71 = vector.shape_cast %70 : vector<1x2x8xf32> to vector<2x8xf32>
    %c2_59 = arith.constant 2 : index
    %c0_60 = arith.constant 0 : index
    %c0_61 = arith.constant 0 : index
    %72 = vector.load %arg2[%c2_59, %c0_60, %c0_61] : memref<8x8x32xf32, #tpu.memory_space<vmem>>, vector<1x8x32xf32>
    %73 = vector.shape_cast %72 : vector<1x8x32xf32> to vector<8x32xf32>
    %c2_62 = arith.constant 2 : index
    %c0_63 = arith.constant 0 : index
    %c0_64 = arith.constant 0 : index
    %74 = vector.load %arg3[%c2_62, %c0_63, %c0_64] : memref<8x1x32xf32, #tpu.memory_space<vmem>>, vector<1x1x32xf32>
    %75 = vector.shape_cast %74 : vector<1x1x32xf32> to vector<1x32xf32>
    %cst_65 = arith.constant dense<0.000000e+00> : vector<2x32xf32>
    %76 = tpu.matmul %71, %73, %cst_65 {dimension_numbers = #tpu.dot_dimension_numbers<[1], [0], [0], [1], [0, 0, 1, 1], [], []>} : vector<2x8xf32>, vector<8x32xf32>, vector<2x32xf32> -> vector<2x32xf32>
    %77 = vector.broadcast %75 : vector<1x32xf32> to vector<2x32xf32>
    %78 = arith.addf %76, %77 : vector<2x32xf32>
    %cst_66 = arith.constant 0.000000e+00 : f32
    %79 = vector.broadcast %cst_66 : f32 to vector<2x32xf32>
    %80 = arith.maximumf %78, %79 : vector<2x32xf32>
    %c2_67 = arith.constant 2 : index
    %c0_68 = arith.constant 0 : index
    %c0_69 = arith.constant 0 : index
    %81 = vector.load %arg4[%c2_67, %c0_68, %c0_69] : memref<8x32x32xf32, #tpu.memory_space<vmem>>, vector<1x32x32xf32>
    %82 = vector.shape_cast %81 : vector<1x32x32xf32> to vector<32x32xf32>
    %c2_70 = arith.constant 2 : index
    %c0_71 = arith.constant 0 : index
    %c0_72 = arith.constant 0 : index
    %83 = vector.load %arg5[%c2_70, %c0_71, %c0_72] : memref<8x1x32xf32, #tpu.memory_space<vmem>>, vector<1x1x32xf32>
    %84 = vector.shape_cast %83 : vector<1x1x32xf32> to vector<1x32xf32>
    %cst_73 = arith.constant dense<0.000000e+00> : vector<2x32xf32>
    %85 = tpu.matmul %80, %82, %cst_73 {dimension_numbers = #tpu.dot_dimension_numbers<[1], [0], [0], [1], [0, 0, 1, 1], [], []>} : vector<2x32xf32>, vector<32x32xf32>, vector<2x32xf32> -> vector<2x32xf32>
    %86 = vector.broadcast %84 : vector<1x32xf32> to vector<2x32xf32>
    %87 = arith.addf %85, %86 : vector<2x32xf32>
    %cst_74 = arith.constant 0.000000e+00 : f32
    %88 = vector.broadcast %cst_74 : f32 to vector<2x32xf32>
    %89 = arith.maximumf %87, %88 : vector<2x32xf32>
    %c2_75 = arith.constant 2 : index
    %c0_76 = arith.constant 0 : index
    %c0_77 = arith.constant 0 : index
    %90 = vector.load %arg6[%c2_75, %c0_76, %c0_77] : memref<8x32x4xf32, #tpu.memory_space<vmem>>, vector<1x32x4xf32>
    %91 = vector.shape_cast %90 : vector<1x32x4xf32> to vector<32x4xf32>
    %c2_78 = arith.constant 2 : index
    %c0_79 = arith.constant 0 : index
    %c0_80 = arith.constant 0 : index
    %92 = vector.load %arg7[%c2_78, %c0_79, %c0_80] : memref<8x1x4xf32, #tpu.memory_space<vmem>>, vector<1x1x4xf32>
    %93 = vector.shape_cast %92 : vector<1x1x4xf32> to vector<1x4xf32>
    %cst_81 = arith.constant dense<0.000000e+00> : vector<2x4xf32>
    %94 = tpu.matmul %89, %91, %cst_81 {dimension_numbers = #tpu.dot_dimension_numbers<[1], [0], [0], [1], [0, 0, 1, 1], [], []>} : vector<2x32xf32>, vector<32x4xf32>, vector<2x4xf32> -> vector<2x4xf32>
    %95 = vector.broadcast %93 : vector<1x4xf32> to vector<2x4xf32>
    %96 = arith.addf %94, %95 : vector<2x4xf32>
    %97 = arith.negf %96 : vector<2x4xf32>
    %98 = math.exp %97 : vector<2x4xf32>
    %cst_82 = arith.constant 1.000000e+00 : f32
    %99 = vector.broadcast %cst_82 : f32 to vector<2x4xf32>
    %100 = arith.addf %99, %98 : vector<2x4xf32>
    %101 = arith.divf %99, %100 : vector<2x4xf32>
    %c2_83 = arith.constant 2 : index
    %c0_84 = arith.constant 0 : index
    %c0_85 = arith.constant 0 : index
    %102 = vector.load %arg8[%c2_83, %c0_84, %c0_85] : memref<8x2x4xf32, #tpu.memory_space<vmem>>, vector<1x2x4xf32>
    %103 = vector.shape_cast %102 : vector<1x2x4xf32> to vector<2x4xf32>
    %104 = vector.shape_cast %101 : vector<2x4xf32> to vector<1x2x4xf32>
    tpu.vector_store %arg8[%c2_83, %c0_84, %c0_85], %104 {strides = array<i32>} : memref<8x2x4xf32, #tpu.memory_space<vmem>>, vector<1x2x4xf32>,
    %c3 = arith.constant 3 : index
    %c0_86 = arith.constant 0 : index
    %c0_87 = arith.constant 0 : index
    %105 = vector.load %arg1[%c3, %c0_86, %c0_87] : memref<8x2x8xf32, #tpu.memory_space<vmem>>, vector<1x2x8xf32>
    %106 = vector.shape_cast %105 : vector<1x2x8xf32> to vector<2x8xf32>
    %c3_88 = arith.constant 3 : index
    %c0_89 = arith.constant 0 : index
    %c0_90 = arith.constant 0 : index
    %107 = vector.load %arg2[%c3_88, %c0_89, %c0_90] : memref<8x8x32xf32, #tpu.memory_space<vmem>>, vector<1x8x32xf32>
    %108 = vector.shape_cast %107 : vector<1x8x32xf32> to vector<8x32xf32>
    %c3_91 = arith.constant 3 : index
    %c0_92 = arith.constant 0 : index
    %c0_93 = arith.constant 0 : index
    %109 = vector.load %arg3[%c3_91, %c0_92, %c0_93] : memref<8x1x32xf32, #tpu.memory_space<vmem>>, vector<1x1x32xf32>
    %110 = vector.shape_cast %109 : vector<1x1x32xf32> to vector<1x32xf32>
    %cst_94 = arith.constant dense<0.000000e+00> : vector<2x32xf32>
    %111 = tpu.matmul %106, %108, %cst_94 {dimension_numbers = #tpu.dot_dimension_numbers<[1], [0], [0], [1], [0, 0, 1, 1], [], []>} : vector<2x8xf32>, vector<8x32xf32>, vector<2x32xf32> -> vector<2x32xf32>
    %112 = vector.broadcast %110 : vector<1x32xf32> to vector<2x32xf32>
    %113 = arith.addf %111, %112 : vector<2x32xf32>
    %cst_95 = arith.constant 0.000000e+00 : f32
    %114 = vector.broadcast %cst_95 : f32 to vector<2x32xf32>
    %115 = arith.maximumf %113, %114 : vector<2x32xf32>
    %c3_96 = arith.constant 3 : index
    %c0_97 = arith.constant 0 : index
    %c0_98 = arith.constant 0 : index
    %116 = vector.load %arg4[%c3_96, %c0_97, %c0_98] : memref<8x32x32xf32, #tpu.memory_space<vmem>>, vector<1x32x32xf32>
    %117 = vector.shape_cast %116 : vector<1x32x32xf32> to vector<32x32xf32>
    %c3_99 = arith.constant 3 : index
    %c0_100 = arith.constant 0 : index
    %c0_101 = arith.constant 0 : index
    %118 = vector.load %arg5[%c3_99, %c0_100, %c0_101] : memref<8x1x32xf32, #tpu.memory_space<vmem>>, vector<1x1x32xf32>
    %119 = vector.shape_cast %118 : vector<1x1x32xf32> to vector<1x32xf32>
    %cst_102 = arith.constant dense<0.000000e+00> : vector<2x32xf32>
    %120 = tpu.matmul %115, %117, %cst_102 {dimension_numbers = #tpu.dot_dimension_numbers<[1], [0], [0], [1], [0, 0, 1, 1], [], []>} : vector<2x32xf32>, vector<32x32xf32>, vector<2x32xf32> -> vector<2x32xf32>
    %121 = vector.broadcast %119 : vector<1x32xf32> to vector<2x32xf32>
    %122 = arith.addf %120, %121 : vector<2x32xf32>
    %cst_103 = arith.constant 0.000000e+00 : f32
    %123 = vector.broadcast %cst_103 : f32 to vector<2x32xf32>
    %124 = arith.maximumf %122, %123 : vector<2x32xf32>
    %c3_104 = arith.constant 3 : index
    %c0_105 = arith.constant 0 : index
    %c0_106 = arith.constant 0 : index
    %125 = vector.load %arg6[%c3_104, %c0_105, %c0_106] : memref<8x32x4xf32, #tpu.memory_space<vmem>>, vector<1x32x4xf32>
    %126 = vector.shape_cast %125 : vector<1x32x4xf32> to vector<32x4xf32>
    %c3_107 = arith.constant 3 : index
    %c0_108 = arith.constant 0 : index
    %c0_109 = arith.constant 0 : index
    %127 = vector.load %arg7[%c3_107, %c0_108, %c0_109] : memref<8x1x4xf32, #tpu.memory_space<vmem>>, vector<1x1x4xf32>
    %128 = vector.shape_cast %127 : vector<1x1x4xf32> to vector<1x4xf32>
    %cst_110 = arith.constant dense<0.000000e+00> : vector<2x4xf32>
    %129 = tpu.matmul %124, %126, %cst_110 {dimension_numbers = #tpu.dot_dimension_numbers<[1], [0], [0], [1], [0, 0, 1, 1], [], []>} : vector<2x32xf32>, vector<32x4xf32>, vector<2x4xf32> -> vector<2x4xf32>
    %130 = vector.broadcast %128 : vector<1x4xf32> to vector<2x4xf32>
    %131 = arith.addf %129, %130 : vector<2x4xf32>
    %132 = arith.negf %131 : vector<2x4xf32>
    %133 = math.exp %132 : vector<2x4xf32>
    %cst_111 = arith.constant 1.000000e+00 : f32
    %134 = vector.broadcast %cst_111 : f32 to vector<2x4xf32>
    %135 = arith.addf %134, %133 : vector<2x4xf32>
    %136 = arith.divf %134, %135 : vector<2x4xf32>
    %c3_112 = arith.constant 3 : index
    %c0_113 = arith.constant 0 : index
    %c0_114 = arith.constant 0 : index
    %137 = vector.load %arg8[%c3_112, %c0_113, %c0_114] : memref<8x2x4xf32, #tpu.memory_space<vmem>>, vector<1x2x4xf32>
    %138 = vector.shape_cast %137 : vector<1x2x4xf32> to vector<2x4xf32>
    %139 = vector.shape_cast %136 : vector<2x4xf32> to vector<1x2x4xf32>
    tpu.vector_store %arg8[%c3_112, %c0_113, %c0_114], %139 {strides = array<i32>} : memref<8x2x4xf32, #tpu.memory_space<vmem>>, vector<1x2x4xf32>,
    %c4 = arith.constant 4 : index
    %c0_115 = arith.constant 0 : index
    %c0_116 = arith.constant 0 : index
    %140 = vector.load %arg1[%c4, %c0_115, %c0_116] : memref<8x2x8xf32, #tpu.memory_space<vmem>>, vector<1x2x8xf32>
    %141 = vector.shape_cast %140 : vector<1x2x8xf32> to vector<2x8xf32>
    %c4_117 = arith.constant 4 : index
    %c0_118 = arith.constant 0 : index
    %c0_119 = arith.constant 0 : index
    %142 = vector.load %arg2[%c4_117, %c0_118, %c0_119] : memref<8x8x32xf32, #tpu.memory_space<vmem>>, vector<1x8x32xf32>
    %143 = vector.shape_cast %142 : vector<1x8x32xf32> to vector<8x32xf32>
    %c4_120 = arith.constant 4 : index
    %c0_121 = arith.constant 0 : index
    %c0_122 = arith.constant 0 : index
    %144 = vector.load %arg3[%c4_120, %c0_121, %c0_122] : memref<8x1x32xf32, #tpu.memory_space<vmem>>, vector<1x1x32xf32>
    %145 = vector.shape_cast %144 : vector<1x1x32xf32> to vector<1x32xf32>
    %cst_123 = arith.constant dense<0.000000e+00> : vector<2x32xf32>
    %146 = tpu.matmul %141, %143, %cst_123 {dimension_numbers = #tpu.dot_dimension_numbers<[1], [0], [0], [1], [0, 0, 1, 1], [], []>} : vector<2x8xf32>, vector<8x32xf32>, vector<2x32xf32> -> vector<2x32xf32>
    %147 = vector.broadcast %145 : vector<1x32xf32> to vector<2x32xf32>
    %148 = arith.addf %146, %147 : vector<2x32xf32>
    %cst_124 = arith.constant 0.000000e+00 : f32
    %149 = vector.broadcast %cst_124 : f32 to vector<2x32xf32>
    %150 = arith.maximumf %148, %149 : vector<2x32xf32>
    %c4_125 = arith.constant 4 : index
    %c0_126 = arith.constant 0 : index
    %c0_127 = arith.constant 0 : index
    %151 = vector.load %arg4[%c4_125, %c0_126, %c0_127] : memref<8x32x32xf32, #tpu.memory_space<vmem>>, vector<1x32x32xf32>
    %152 = vector.shape_cast %151 : vector<1x32x32xf32> to vector<32x32xf32>
    %c4_128 = arith.constant 4 : index
    %c0_129 = arith.constant 0 : index
    %c0_130 = arith.constant 0 : index
    %153 = vector.load %arg5[%c4_128, %c0_129, %c0_130] : memref<8x1x32xf32, #tpu.memory_space<vmem>>, vector<1x1x32xf32>
    %154 = vector.shape_cast %153 : vector<1x1x32xf32> to vector<1x32xf32>
    %cst_131 = arith.constant dense<0.000000e+00> : vector<2x32xf32>
    %155 = tpu.matmul %150, %152, %cst_131 {dimension_numbers = #tpu.dot_dimension_numbers<[1], [0], [0], [1], [0, 0, 1, 1], [], []>} : vector<2x32xf32>, vector<32x32xf32>, vector<2x32xf32> -> vector<2x32xf32>
    %156 = vector.broadcast %154 : vector<1x32xf32> to vector<2x32xf32>
    %157 = arith.addf %155, %156 : vector<2x32xf32>
    %cst_132 = arith.constant 0.000000e+00 : f32
    %158 = vector.broadcast %cst_132 : f32 to vector<2x32xf32>
    %159 = arith.maximumf %157, %158 : vector<2x32xf32>
    %c4_133 = arith.constant 4 : index
    %c0_134 = arith.constant 0 : index
    %c0_135 = arith.constant 0 : index
    %160 = vector.load %arg6[%c4_133, %c0_134, %c0_135] : memref<8x32x4xf32, #tpu.memory_space<vmem>>, vector<1x32x4xf32>
    %161 = vector.shape_cast %160 : vector<1x32x4xf32> to vector<32x4xf32>
    %c4_136 = arith.constant 4 : index
    %c0_137 = arith.constant 0 : index
    %c0_138 = arith.constant 0 : index
    %162 = vector.load %arg7[%c4_136, %c0_137, %c0_138] : memref<8x1x4xf32, #tpu.memory_space<vmem>>, vector<1x1x4xf32>
    %163 = vector.shape_cast %162 : vector<1x1x4xf32> to vector<1x4xf32>
    %cst_139 = arith.constant dense<0.000000e+00> : vector<2x4xf32>
    %164 = tpu.matmul %159, %161, %cst_139 {dimension_numbers = #tpu.dot_dimension_numbers<[1], [0], [0], [1], [0, 0, 1, 1], [], []>} : vector<2x32xf32>, vector<32x4xf32>, vector<2x4xf32> -> vector<2x4xf32>
    %165 = vector.broadcast %163 : vector<1x4xf32> to vector<2x4xf32>
    %166 = arith.addf %164, %165 : vector<2x4xf32>
    %167 = arith.negf %166 : vector<2x4xf32>
    %168 = math.exp %167 : vector<2x4xf32>
    %cst_140 = arith.constant 1.000000e+00 : f32
    %169 = vector.broadcast %cst_140 : f32 to vector<2x4xf32>
    %170 = arith.addf %169, %168 : vector<2x4xf32>
    %171 = arith.divf %169, %170 : vector<2x4xf32>
    %c4_141 = arith.constant 4 : index
    %c0_142 = arith.constant 0 : index
    %c0_143 = arith.constant 0 : index
    %172 = vector.load %arg8[%c4_141, %c0_142, %c0_143] : memref<8x2x4xf32, #tpu.memory_space<vmem>>, vector<1x2x4xf32>
    %173 = vector.shape_cast %172 : vector<1x2x4xf32> to vector<2x4xf32>
    %174 = vector.shape_cast %171 : vector<2x4xf32> to vector<1x2x4xf32>
    tpu.vector_store %arg8[%c4_141, %c0_142, %c0_143], %174 {strides = array<i32>} : memref<8x2x4xf32, #tpu.memory_space<vmem>>, vector<1x2x4xf32>,
    %c5 = arith.constant 5 : index
    %c0_144 = arith.constant 0 : index
    %c0_145 = arith.constant 0 : index
    %175 = vector.load %arg1[%c5, %c0_144, %c0_145] : memref<8x2x8xf32, #tpu.memory_space<vmem>>, vector<1x2x8xf32>
    %176 = vector.shape_cast %175 : vector<1x2x8xf32> to vector<2x8xf32>
    %c5_146 = arith.constant 5 : index
    %c0_147 = arith.constant 0 : index
    %c0_148 = arith.constant 0 : index
    %177 = vector.load %arg2[%c5_146, %c0_147, %c0_148] : memref<8x8x32xf32, #tpu.memory_space<vmem>>, vector<1x8x32xf32>
    %178 = vector.shape_cast %177 : vector<1x8x32xf32> to vector<8x32xf32>
    %c5_149 = arith.constant 5 : index
    %c0_150 = arith.constant 0 : index
    %c0_151 = arith.constant 0 : index
    %179 = vector.load %arg3[%c5_149, %c0_150, %c0_151] : memref<8x1x32xf32, #tpu.memory_space<vmem>>, vector<1x1x32xf32>
    %180 = vector.shape_cast %179 : vector<1x1x32xf32> to vector<1x32xf32>
    %cst_152 = arith.constant dense<0.000000e+00> : vector<2x32xf32>
    %181 = tpu.matmul %176, %178, %cst_152 {dimension_numbers = #tpu.dot_dimension_numbers<[1], [0], [0], [1], [0, 0, 1, 1], [], []>} : vector<2x8xf32>, vector<8x32xf32>, vector<2x32xf32> -> vector<2x32xf32>
    %182 = vector.broadcast %180 : vector<1x32xf32> to vector<2x32xf32>
    %183 = arith.addf %181, %182 : vector<2x32xf32>
    %cst_153 = arith.constant 0.000000e+00 : f32
    %184 = vector.broadcast %cst_153 : f32 to vector<2x32xf32>
    %185 = arith.maximumf %183, %184 : vector<2x32xf32>
    %c5_154 = arith.constant 5 : index
    %c0_155 = arith.constant 0 : index
    %c0_156 = arith.constant 0 : index
    %186 = vector.load %arg4[%c5_154, %c0_155, %c0_156] : memref<8x32x32xf32, #tpu.memory_space<vmem>>, vector<1x32x32xf32>
    %187 = vector.shape_cast %186 : vector<1x32x32xf32> to vector<32x32xf32>
    %c5_157 = arith.constant 5 : index
    %c0_158 = arith.constant 0 : index
    %c0_159 = arith.constant 0 : index
    %188 = vector.load %arg5[%c5_157, %c0_158, %c0_159] : memref<8x1x32xf32, #tpu.memory_space<vmem>>, vector<1x1x32xf32>
    %189 = vector.shape_cast %188 : vector<1x1x32xf32> to vector<1x32xf32>
    %cst_160 = arith.constant dense<0.000000e+00> : vector<2x32xf32>
    %190 = tpu.matmul %185, %187, %cst_160 {dimension_numbers = #tpu.dot_dimension_numbers<[1], [0], [0], [1], [0, 0, 1, 1], [], []>} : vector<2x32xf32>, vector<32x32xf32>, vector<2x32xf32> -> vector<2x32xf32>
    %191 = vector.broadcast %189 : vector<1x32xf32> to vector<2x32xf32>
    %192 = arith.addf %190, %191 : vector<2x32xf32>
    %cst_161 = arith.constant 0.000000e+00 : f32
    %193 = vector.broadcast %cst_161 : f32 to vector<2x32xf32>
    %194 = arith.maximumf %192, %193 : vector<2x32xf32>
    %c5_162 = arith.constant 5 : index
    %c0_163 = arith.constant 0 : index
    %c0_164 = arith.constant 0 : index
    %195 = vector.load %arg6[%c5_162, %c0_163, %c0_164] : memref<8x32x4xf32, #tpu.memory_space<vmem>>, vector<1x32x4xf32>
    %196 = vector.shape_cast %195 : vector<1x32x4xf32> to vector<32x4xf32>
    %c5_165 = arith.constant 5 : index
    %c0_166 = arith.constant 0 : index
    %c0_167 = arith.constant 0 : index
    %197 = vector.load %arg7[%c5_165, %c0_166, %c0_167] : memref<8x1x4xf32, #tpu.memory_space<vmem>>, vector<1x1x4xf32>
    %198 = vector.shape_cast %197 : vector<1x1x4xf32> to vector<1x4xf32>
    %cst_168 = arith.constant dense<0.000000e+00> : vector<2x4xf32>
    %199 = tpu.matmul %194, %196, %cst_168 {dimension_numbers = #tpu.dot_dimension_numbers<[1], [0], [0], [1], [0, 0, 1, 1], [], []>} : vector<2x32xf32>, vector<32x4xf32>, vector<2x4xf32> -> vector<2x4xf32>
    %200 = vector.broadcast %198 : vector<1x4xf32> to vector<2x4xf32>
    %201 = arith.addf %199, %200 : vector<2x4xf32>
    %202 = arith.negf %201 : vector<2x4xf32>
    %203 = math.exp %202 : vector<2x4xf32>
    %cst_169 = arith.constant 1.000000e+00 : f32
    %204 = vector.broadcast %cst_169 : f32 to vector<2x4xf32>
    %205 = arith.addf %204, %203 : vector<2x4xf32>
    %206 = arith.divf %204, %205 : vector<2x4xf32>
    %c5_170 = arith.constant 5 : index
    %c0_171 = arith.constant 0 : index
    %c0_172 = arith.constant 0 : index
    %207 = vector.load %arg8[%c5_170, %c0_171, %c0_172] : memref<8x2x4xf32, #tpu.memory_space<vmem>>, vector<1x2x4xf32>
    %208 = vector.shape_cast %207 : vector<1x2x4xf32> to vector<2x4xf32>
    %209 = vector.shape_cast %206 : vector<2x4xf32> to vector<1x2x4xf32>
    tpu.vector_store %arg8[%c5_170, %c0_171, %c0_172], %209 {strides = array<i32>} : memref<8x2x4xf32, #tpu.memory_space<vmem>>, vector<1x2x4xf32>,
    %c6 = arith.constant 6 : index
    %c0_173 = arith.constant 0 : index
    %c0_174 = arith.constant 0 : index
    %210 = vector.load %arg1[%c6, %c0_173, %c0_174] : memref<8x2x8xf32, #tpu.memory_space<vmem>>, vector<1x2x8xf32>
    %211 = vector.shape_cast %210 : vector<1x2x8xf32> to vector<2x8xf32>
    %c6_175 = arith.constant 6 : index
    %c0_176 = arith.constant 0 : index
    %c0_177 = arith.constant 0 : index
    %212 = vector.load %arg2[%c6_175, %c0_176, %c0_177] : memref<8x8x32xf32, #tpu.memory_space<vmem>>, vector<1x8x32xf32>
    %213 = vector.shape_cast %212 : vector<1x8x32xf32> to vector<8x32xf32>
    %c6_178 = arith.constant 6 : index
    %c0_179 = arith.constant 0 : index
    %c0_180 = arith.constant 0 : index
    %214 = vector.load %arg3[%c6_178, %c0_179, %c0_180] : memref<8x1x32xf32, #tpu.memory_space<vmem>>, vector<1x1x32xf32>
    %215 = vector.shape_cast %214 : vector<1x1x32xf32> to vector<1x32xf32>
    %cst_181 = arith.constant dense<0.000000e+00> : vector<2x32xf32>
    %216 = tpu.matmul %211, %213, %cst_181 {dimension_numbers = #tpu.dot_dimension_numbers<[1], [0], [0], [1], [0, 0, 1, 1], [], []>} : vector<2x8xf32>, vector<8x32xf32>, vector<2x32xf32> -> vector<2x32xf32>
    %217 = vector.broadcast %215 : vector<1x32xf32> to vector<2x32xf32>
    %218 = arith.addf %216, %217 : vector<2x32xf32>
    %cst_182 = arith.constant 0.000000e+00 : f32
    %219 = vector.broadcast %cst_182 : f32 to vector<2x32xf32>
    %220 = arith.maximumf %218, %219 : vector<2x32xf32>
    %c6_183 = arith.constant 6 : index
    %c0_184 = arith.constant 0 : index
    %c0_185 = arith.constant 0 : index
    %221 = vector.load %arg4[%c6_183, %c0_184, %c0_185] : memref<8x32x32xf32, #tpu.memory_space<vmem>>, vector<1x32x32xf32>
    %222 = vector.shape_cast %221 : vector<1x32x32xf32> to vector<32x32xf32>
    %c6_186 = arith.constant 6 : index
    %c0_187 = arith.constant 0 : index
    %c0_188 = arith.constant 0 : index
    %223 = vector.load %arg5[%c6_186, %c0_187, %c0_188] : memref<8x1x32xf32, #tpu.memory_space<vmem>>, vector<1x1x32xf32>
    %224 = vector.shape_cast %223 : vector<1x1x32xf32> to vector<1x32xf32>
    %cst_189 = arith.constant dense<0.000000e+00> : vector<2x32xf32>
    %225 = tpu.matmul %220, %222, %cst_189 {dimension_numbers = #tpu.dot_dimension_numbers<[1], [0], [0], [1], [0, 0, 1, 1], [], []>} : vector<2x32xf32>, vector<32x32xf32>, vector<2x32xf32> -> vector<2x32xf32>
    %226 = vector.broadcast %224 : vector<1x32xf32> to vector<2x32xf32>
    %227 = arith.addf %225, %226 : vector<2x32xf32>
    %cst_190 = arith.constant 0.000000e+00 : f32
    %228 = vector.broadcast %cst_190 : f32 to vector<2x32xf32>
    %229 = arith.maximumf %227, %228 : vector<2x32xf32>
    %c6_191 = arith.constant 6 : index
    %c0_192 = arith.constant 0 : index
    %c0_193 = arith.constant 0 : index
    %230 = vector.load %arg6[%c6_191, %c0_192, %c0_193] : memref<8x32x4xf32, #tpu.memory_space<vmem>>, vector<1x32x4xf32>
    %231 = vector.shape_cast %230 : vector<1x32x4xf32> to vector<32x4xf32>
    %c6_194 = arith.constant 6 : index
    %c0_195 = arith.constant 0 : index
    %c0_196 = arith.constant 0 : index
    %232 = vector.load %arg7[%c6_194, %c0_195, %c0_196] : memref<8x1x4xf32, #tpu.memory_space<vmem>>, vector<1x1x4xf32>
    %233 = vector.shape_cast %232 : vector<1x1x4xf32> to vector<1x4xf32>
    %cst_197 = arith.constant dense<0.000000e+00> : vector<2x4xf32>
    %234 = tpu.matmul %229, %231, %cst_197 {dimension_numbers = #tpu.dot_dimension_numbers<[1], [0], [0], [1], [0, 0, 1, 1], [], []>} : vector<2x32xf32>, vector<32x4xf32>, vector<2x4xf32> -> vector<2x4xf32>
    %235 = vector.broadcast %233 : vector<1x4xf32> to vector<2x4xf32>
    %236 = arith.addf %234, %235 : vector<2x4xf32>
    %237 = arith.negf %236 : vector<2x4xf32>
    %238 = math.exp %237 : vector<2x4xf32>
    %cst_198 = arith.constant 1.000000e+00 : f32
    %239 = vector.broadcast %cst_198 : f32 to vector<2x4xf32>
    %240 = arith.addf %239, %238 : vector<2x4xf32>
    %241 = arith.divf %239, %240 : vector<2x4xf32>
    %c6_199 = arith.constant 6 : index
    %c0_200 = arith.constant 0 : index
    %c0_201 = arith.constant 0 : index
    %242 = vector.load %arg8[%c6_199, %c0_200, %c0_201] : memref<8x2x4xf32, #tpu.memory_space<vmem>>, vector<1x2x4xf32>
    %243 = vector.shape_cast %242 : vector<1x2x4xf32> to vector<2x4xf32>
    %244 = vector.shape_cast %241 : vector<2x4xf32> to vector<1x2x4xf32>
    tpu.vector_store %arg8[%c6_199, %c0_200, %c0_201], %244 {strides = array<i32>} : memref<8x2x4xf32, #tpu.memory_space<vmem>>, vector<1x2x4xf32>,
    %c7 = arith.constant 7 : index
    %c0_202 = arith.constant 0 : index
    %c0_203 = arith.constant 0 : index
    %245 = vector.load %arg1[%c7, %c0_202, %c0_203] : memref<8x2x8xf32, #tpu.memory_space<vmem>>, vector<1x2x8xf32>
    %246 = vector.shape_cast %245 : vector<1x2x8xf32> to vector<2x8xf32>
    %c7_204 = arith.constant 7 : index
    %c0_205 = arith.constant 0 : index
    %c0_206 = arith.constant 0 : index
    %247 = vector.load %arg2[%c7_204, %c0_205, %c0_206] : memref<8x8x32xf32, #tpu.memory_space<vmem>>, vector<1x8x32xf32>
    %248 = vector.shape_cast %247 : vector<1x8x32xf32> to vector<8x32xf32>
    %c7_207 = arith.constant 7 : index
    %c0_208 = arith.constant 0 : index
    %c0_209 = arith.constant 0 : index
    %249 = vector.load %arg3[%c7_207, %c0_208, %c0_209] : memref<8x1x32xf32, #tpu.memory_space<vmem>>, vector<1x1x32xf32>
    %250 = vector.shape_cast %249 : vector<1x1x32xf32> to vector<1x32xf32>
    %cst_210 = arith.constant dense<0.000000e+00> : vector<2x32xf32>
    %251 = tpu.matmul %246, %248, %cst_210 {dimension_numbers = #tpu.dot_dimension_numbers<[1], [0], [0], [1], [0, 0, 1, 1], [], []>} : vector<2x8xf32>, vector<8x32xf32>, vector<2x32xf32> -> vector<2x32xf32>
    %252 = vector.broadcast %250 : vector<1x32xf32> to vector<2x32xf32>
    %253 = arith.addf %251, %252 : vector<2x32xf32>
    %cst_211 = arith.constant 0.000000e+00 : f32
    %254 = vector.broadcast %cst_211 : f32 to vector<2x32xf32>
    %255 = arith.maximumf %253, %254 : vector<2x32xf32>
    %c7_212 = arith.constant 7 : index
    %c0_213 = arith.constant 0 : index
    %c0_214 = arith.constant 0 : index
    %256 = vector.load %arg4[%c7_212, %c0_213, %c0_214] : memref<8x32x32xf32, #tpu.memory_space<vmem>>, vector<1x32x32xf32>
    %257 = vector.shape_cast %256 : vector<1x32x32xf32> to vector<32x32xf32>
    %c7_215 = arith.constant 7 : index
    %c0_216 = arith.constant 0 : index
    %c0_217 = arith.constant 0 : index
    %258 = vector.load %arg5[%c7_215, %c0_216, %c0_217] : memref<8x1x32xf32, #tpu.memory_space<vmem>>, vector<1x1x32xf32>
    %259 = vector.shape_cast %258 : vector<1x1x32xf32> to vector<1x32xf32>
    %cst_218 = arith.constant dense<0.000000e+00> : vector<2x32xf32>
    %260 = tpu.matmul %255, %257, %cst_218 {dimension_numbers = #tpu.dot_dimension_numbers<[1], [0], [0], [1], [0, 0, 1, 1], [], []>} : vector<2x32xf32>, vector<32x32xf32>, vector<2x32xf32> -> vector<2x32xf32>
    %261 = vector.broadcast %259 : vector<1x32xf32> to vector<2x32xf32>
    %262 = arith.addf %260, %261 : vector<2x32xf32>
    %cst_219 = arith.constant 0.000000e+00 : f32
    %263 = vector.broadcast %cst_219 : f32 to vector<2x32xf32>
    %264 = arith.maximumf %262, %263 : vector<2x32xf32>
    %c7_220 = arith.constant 7 : index
    %c0_221 = arith.constant 0 : index
    %c0_222 = arith.constant 0 : index
    %265 = vector.load %arg6[%c7_220, %c0_221, %c0_222] : memref<8x32x4xf32, #tpu.memory_space<vmem>>, vector<1x32x4xf32>
    %266 = vector.shape_cast %265 : vector<1x32x4xf32> to vector<32x4xf32>
    %c7_223 = arith.constant 7 : index
    %c0_224 = arith.constant 0 : index
    %c0_225 = arith.constant 0 : index
    %267 = vector.load %arg7[%c7_223, %c0_224, %c0_225] : memref<8x1x4xf32, #tpu.memory_space<vmem>>, vector<1x1x4xf32>
    %268 = vector.shape_cast %267 : vector<1x1x4xf32> to vector<1x4xf32>
    %cst_226 = arith.constant dense<0.000000e+00> : vector<2x4xf32>
    %269 = tpu.matmul %264, %266, %cst_226 {dimension_numbers = #tpu.dot_dimension_numbers<[1], [0], [0], [1], [0, 0, 1, 1], [], []>} : vector<2x32xf32>, vector<32x4xf32>, vector<2x4xf32> -> vector<2x4xf32>
    %270 = vector.broadcast %268 : vector<1x4xf32> to vector<2x4xf32>
    %271 = arith.addf %269, %270 : vector<2x4xf32>
    %272 = arith.negf %271 : vector<2x4xf32>
    %273 = math.exp %272 : vector<2x4xf32>
    %cst_227 = arith.constant 1.000000e+00 : f32
    %274 = vector.broadcast %cst_227 : f32 to vector<2x4xf32>
    %275 = arith.addf %274, %273 : vector<2x4xf32>
    %276 = arith.divf %274, %275 : vector<2x4xf32>
    %c7_228 = arith.constant 7 : index
    %c0_229 = arith.constant 0 : index
    %c0_230 = arith.constant 0 : index
    %277 = vector.load %arg8[%c7_228, %c0_229, %c0_230] : memref<8x2x4xf32, #tpu.memory_space<vmem>>, vector<1x2x4xf32>
    %278 = vector.shape_cast %277 : vector<1x2x4xf32> to vector<2x4xf32>
    %279 = vector.shape_cast %276 : vector<2x4xf32> to vector<1x2x4xf32>
    tpu.vector_store %arg8[%c7_228, %c0_229, %c0_230], %279 {strides = array<i32>} : memref<8x2x4xf32, #tpu.memory_space<vmem>>, vector<1x2x4xf32>,
    return
  }
  func.func @transform_0(%arg0: i32) -> (i32, i32, i32) {
    %c0_i32 = arith.constant 0 : i32
    %c0_i32_0 = arith.constant 0 : i32
    %c0_i32_1 = arith.constant 0 : i32
    return %arg0, %c0_i32, %c0_i32_0 : i32, i32, i32
  }
  func.func @transform_1(%arg0: i32) -> (i32, i32, i32) {
    %c0_i32 = arith.constant 0 : i32
    %c0_i32_0 = arith.constant 0 : i32
    %c0_i32_1 = arith.constant 0 : i32
    return %arg0, %c0_i32, %c0_i32_0 : i32, i32, i32
  }
  func.func @transform_2(%arg0: i32) -> (i32, i32, i32) {
    %c0_i32 = arith.constant 0 : i32
    %c0_i32_0 = arith.constant 0 : i32
    %c0_i32_1 = arith.constant 0 : i32
    return %arg0, %c0_i32, %c0_i32_0 : i32, i32, i32
  }
  func.func @transform_3(%arg0: i32) -> (i32, i32, i32) {
    %c0_i32 = arith.constant 0 : i32
    %c0_i32_0 = arith.constant 0 : i32
    %c0_i32_1 = arith.constant 0 : i32
    return %arg0, %c0_i32, %c0_i32_0 : i32, i32, i32
  }
  func.func @transform_4(%arg0: i32) -> (i32, i32, i32) {
    %c0_i32 = arith.constant 0 : i32
    %c0_i32_0 = arith.constant 0 : i32
    %c0_i32_1 = arith.constant 0 : i32
    return %arg0, %c0_i32, %c0_i32_0 : i32, i32, i32
  }
  func.func @transform_5(%arg0: i32) -> (i32, i32, i32) {
    %c0_i32 = arith.constant 0 : i32
    %c0_i32_0 = arith.constant 0 : i32
    %c0_i32_1 = arith.constant 0 : i32
    return %arg0, %c0_i32, %c0_i32_0 : i32, i32, i32
  }
  func.func @transform_6(%arg0: i32) -> (i32, i32, i32) {
    %c0_i32 = arith.constant 0 : i32
    %c0_i32_0 = arith.constant 0 : i32
    %c0_i32_1 = arith.constant 0 : i32
    return %arg0, %c0_i32, %c0_i32_0 : i32, i32, i32
  }
  func.func @transform_7(%arg0: i32) -> (i32, i32, i32) {
    %c0_i32 = arith.constant 0 : i32
    %c0_i32_0 = arith.constant 0 : i32
    %c0_i32_1 = arith.constant 0 : i32
    return %arg0, %c0_i32, %c0_i32_0 : i32, i32, i32
  }
}

</mosaic_0001>

<bundles_post_ra>
// kernel: tpu_custom_call.1
= control target key start
LH: loop header
LB: loop body
LE: loop exit
PB: predicated region body
PF: predicated region fallthrough
CT: control target
= control target key end

     0   :  { %12 = vsyncpa [#allocation3], 0  ;;  %s3921_s0 = inlined_call_operand.vmem [shape: f32[16,2,8], index: 0, kind: input, shape index: {}]   ;;  %s3922_s1 = inlined_call_operand.vmem [shape: f32[16,8,32], index: 1, kind: input, shape index: {}]   ;;  %s3923_s2 = inlined_call_operand.hbm [shape: f32[16,1,32], index: 2, kind: input, shape index: {}]   ;;  %s3924_s3 = inlined_call_operand.vmem [shape: f32[16,32,32], index: 3, kind: input, shape index: {}]   ;;  %s3925_s4 = inlined_call_operand.hbm [shape: f32[16,1,32], index: 4, kind: input, shape index: {}]   ;;  %s3926_s5 = inlined_call_operand.vmem [shape: f32[16,32,4], index: 5, kind: input, shape index: {}]   ;;  %s3927_s6 = inlined_call_operand.vmem [shape: f32[16,1,4], index: 6, kind: input, shape index: {}]   ;;  %s3928_s7 = inlined_call_operand.vmem [shape: f32[16,2,4], index: 7, kind: output, shape index: {}]  }
   0x1   :  { %14 = vsyncpa [#allocation3 + $0x1], 0 }
   0x2   :  { %15 = vsyncpa [#allocation5], 0 }
   0x3   :  { %17 = vsyncpa [#allocation5 + $0x1], 0  ;;  %s3453_s24 = smov 0   ;;  %s3455_s25 = smov 0  }
   0x4   :  { %s3457_s26 = smov 0   ;;  %s3459_s27 = smov 0  }
   0x5 LB: > { %s2733_s28 = sadd.s32 4294967295, %s3405_s27   ;;  %s3473_s29 = sadd.s32 1, %s3405_s27   ;;  %s3405_s27 = sphi %s3459_s27, %s3938_s27   ;;  %s3401_s26 = sphi %s3457_s26, %s3937_s26   ;;  %s3397_s25 = sphi %s3455_s25, %s3936_s25   ;;  %s3393_s24 = sphi %s3453_s24, %s3935_s24  }
   0x6   : > { %s79_s30 = ssub.s32 %s3405_s27, %s3473_s29  ;;  %s82_s8 = sadd.s32 1, %s3401_s26 }
   0x7   : > { %p80_p0 = scmp.eq.s32.totalorder %s79_s30, 0  ;;  %p89_p1 = scmp.ne.s32.totalorder %s3401_s26, %s3397_s25 }
   0x8   : > { %p90_p2 = scmp.eq.s32.totalorder %s3405_s27, 0  ;;  %p95_p3 = scmp.ne.s32.totalorder %s3397_s25, %s3393_s24 }
   0x9   : > { %s3483_s9 = scalar_select %p80_p0, %s3401_s26, %s82_s8  }
   0xa   : > { %p91_p4 = por %p90_p2, %p89_p1  ;;  %p96_p5 = scmp.eq.s32.totalorder %s2733_s28, 0 }
   0xb   : > { %p3242_p6 = scmp.lt.s32.totalorder %s3405_s27, 2  ;;  %s3493_s11 = sand.u32 1, %s3401_s26  }
   0xc   : > { %p3488_p7 = por %p96_p5, %p95_p3  ;;  %s2737_s12 = sshll.u32 %s3493_s11, 3 }
   0xd   : > { %s2915_s13 = sshll.u32 %s3405_s27, 7  ;;  %s271_s17 = scalar_lea.vmem [#allocation2], %s2737_s12 }
   0xe   : > { %s3930_s10 = scalar_select %p3488_p7, 1, 0 }
   0xf   : > { %s3502_s16 = scalar_lea.hbm %s3923_s2, %s2915_s13  ;;  %s278_s18 = sshll.u32 %s271_s17, 4  ;;  %s3506_s18 = int_to_ptr.vmem [resolvable:$true] %s278_s18 }
  0x10   : > { %p3508_p8 = pnand %p3242_p6, %p91_p4  ;;  %s268_s20 = scalar_lea.sflag [#allocation3], %s3493_s11 }
  0x11   : > { %s3311_s21 = scalar_lea.hbm %s3502_s16, 128  ;;  %s3316_s24 = scalar_lea.hbm %s3923_s2, 256 }
  0x12   : > { %p3312_p10 = scmp.ne.s32.totalorder %s3502_s16, %s3311_s21  ;;  %p3313_p11 = pneg %p3508_p8 }
  0x13   : > { %p3317_p0 = scmp.lt.s32.totalorder %s3502_s16, %s3923_s2  ;;  %p3318_p1 = scmp.lt.s32.totalorder %s3316_s24, %s3311_s21 }
  0x14   : > { %p3314_p12 = pnand %p3313_p11, %p3312_p10 }
  0x15   : > { %p3319_p2 = por %p3318_p1, %p3317_p0 }
  0x16   : > { %p3315_p13 = pneg %p3314_p12 }
  0x18   : > { %p3320_p3 = pnand %p3319_p2, %p3315_p13 }
  0x1a   : > { %3323 = shalt.err (!%p3320_p3)
}
  0x1b   : > { %s3324_s14 = scalar_lea.vmem %s3506_s18, 128  ;;  %s3407_s15 = smov [#allocation2]  }
  0x1c   : > { %p3325_p4 = scmp.ne.s32.totalorder %s3506_s18, %s3324_s14  ;;  %s3329_s17 = sshll.u32 %s3407_s15, 4  ;;  %s3330_s17 = int_to_ptr.vmem [resolvable:$false] %s3329_s17 }
  0x1d   : > { %s3331_s22 = scalar_lea.vmem %s3330_s17, 256  ;;  %p3332_p10 = scmp.lt.s32.totalorder %s3506_s18, %s3330_s17 }
  0x1e   : > { %p3327_p5 = pnand %p3325_p4, %p3313_p11  ;;  %p3333_p12 = scmp.lt.s32.totalorder %s3331_s22, %s3324_s14 }
  0x20   : > { %p3328_p6 = pneg %p3327_p5  ;;  %p3334_p9 = por %p3333_p12, %p3332_p10 }
  0x22   : > { %p3335_p0 = pnand %p3334_p9, %p3328_p6 }
  0x24   : > { %3338 = shalt.err (!%p3335_p0)
}
  0x25   : > { %s3408_s21 = smov 16   ;;  %s3409_s23 = smov 1  }
  0x26   : > { %3238 = dma.hbm_to_vmem [thread:$0]  (!%p3508_p8), %s3502_s16, 128, %s3506_s18, %s268_s20, %s3408_s21, %s3408_s21, %s3409_s23  }
  0x27   : > { %p335_p9 = scmp.lt.s32.totalorder %s3405_s27, 3  ;;  %s3549_s8 = scalar_lea.hbm %s3925_s4, %s2915_s13 }
  0x28   : > { %p3932_p13 = scmp.ge.s32.totalorder %s3405_s27, 1  ;;  %s302_s15 = scalar_lea.vmem [#allocation4], %s2737_s12 }
  0x29   : > { %s309_s17 = sshll.u32 %s302_s15, 4  ;;  %s299_s16 = scalar_lea.sflag [#allocation5], %s3493_s11  ;;  %s3559_s17 = int_to_ptr.vmem [resolvable:$true] %s309_s17 }
  0x2a   : > { %p3553_p1 = pnand %p3932_p13, %p335_p9  ;;  %s3339_s18 = scalar_lea.hbm %s3549_s8, 128 }
  0x2b   : > { %p3340_p2 = scmp.ne.s32.totalorder %s3549_s8, %s3339_s18  ;;  %s3344_s22 = scalar_lea.hbm %s3925_s4, 256 }
  0x2c   : > { %p3345_p5 = scmp.lt.s32.totalorder %s3549_s8, %s3925_s4  ;;  %p3346_p6 = scmp.lt.s32.totalorder %s3344_s22, %s3339_s18 }
  0x2d   : > { %p3342_p3 = pnand %p3340_p2, %p3313_p11 }
  0x2e   : > { %p3347_p10 = por %p3346_p6, %p3345_p5 }
  0x2f   : > { %p3343_p4 = pneg %p3342_p3 }
  0x31   : > { %p3348_p12 = pnand %p3347_p10, %p3343_p4 }
  0x33   : > { %3351 = shalt.err (!%p3348_p12)
}
  0x34   : > { %s3352_s11 = scalar_lea.vmem %s3559_s17, 128  ;;  %s3410_s12 = smov [#allocation4]  }
  0x35   : > { %p3353_p0 = scmp.ne.s32.totalorder %s3559_s17, %s3352_s11  ;;  %s3357_s15 = sshll.u32 %s3410_s12, 4  ;;  %s3358_s15 = int_to_ptr.vmem [resolvable:$false] %s3357_s15 }
  0x36   : > { %s3359_s13 = scalar_lea.vmem %s3358_s15, 256  ;;  %p3360_p2 = scmp.lt.s32.totalorder %s3559_s17, %s3358_s15 }
  0x37   : > { %p3355_p9 = pnand %p3353_p0, %p3313_p11  ;;  %p3361_p3 = scmp.lt.s32.totalorder %s3359_s13, %s3352_s11 }
  0x39   : > { %p3356_p13 = pneg %p3355_p9  ;;  %p3362_p7 = por %p3361_p3, %p3360_p2 }
  0x3b   : > { %p3363_p5 = pnand %p3362_p7, %p3356_p13 }
  0x3d   : > { %3366 = shalt.err (!%p3363_p5)
}
  0x3e   : > { %3241 = dma.hbm_to_vmem [thread:$0]  (!%p3508_p8), %s3549_s8, 128, %s3559_s17, %s299_s16, %s3408_s21, %s3408_s21, %s3409_s23  }
  0x3f   : > { %339 = sbr.rel (%p3553_p1) target bundleno = 2137 (0x859), region = 48  ;;  %s341_s18 = sand.u32 (!%p3553_p1), 1, %s3397_s25  }
  0x40   : > { %s2744_s20 = sshll.u32 (!%p3553_p1), %s341_s18, 3  ;;  %s342_s22 = scalar_lea.sflag (!%p3553_p1), [#allocation3], %s341_s18 }
  0x41   : > { %s3590_s24 = scalar_lea.vmem (!%p3553_p1), [#allocation2], %s2744_s20  ;;  %p3934_p7 = scmp.ne.s32.totalorder (!%p3553_p1), %s3930_s10, 0 }
  0x44   : > { %3384 = dma.done.wait (%p3934_p7), %s342_s22, 128  }
  0x45   : > { %3386 = vsyncadd (%p3934_p7), %s342_s22, 4294967168  ;;  %s351_s19 = scalar_lea.sflag [#allocation5], %s341_s18  ;;  %s3596_s30 = scalar_lea.vmem [#allocation4], %s2744_s20 }
  0x46   : > { %3388 = dma.done.wait (%p3934_p7), %s351_s19, 128  }
  0x47   : > { %3390 = vsyncadd (%p3934_p7), %s351_s19, 4294967168  ;;  %s2746_s21 = sshll.u32 %s2733_s28, 3  ;;  %v3411_v0 = vmov 0.0   ;;  %vm3412_vm0 = vmmov 0   ;;  %vm464_vm1 = vcmask 64512   ;;  %vm550_vm2 = vcmask 261120  }
  0x48   : > { %3015 = vmatprep.subr.mxu0 %v3411_v0  ;;  %p417_p8 = scmp.lt.s32.totalorder %s2746_s21, 15  ;;  %3017 = vmatprep.mubr.msk.f32.mxu0 %vm3412_vm0, %v3411_v0  ;;  %v2759_v9 = vld [vmem:[%s3590_s24] ss:$0 sm:$0xff]  ;;  %v2761_v18 = vld [vmem:[%s3596_s30] ss:$0 sm:$0xff]  ;;  %vm715_vm3 = vcmask 25600  }
  0x49   : > { %3020 = vmatprep.subr.mxu1 %v3411_v0  ;;  %3028 = vmatprep.mubr.msk.f32.mxu1 %vm3412_vm0, %v3411_v0  ;;  %v2769_v22 = vld [vmem:[%s3590_s24 + $0x1] ss:$0 sm:$0xff]  ;;  %v2776_v43 = vld [vmem:[%s3596_s30 + $0x1] ss:$0 sm:$0xff]  ;;  %v2790_v47 = vld [vmem:[%s3590_s24 + $0x2] ss:$0 sm:$0xff] }
  0x4a   : > { %s3940_s21 = smov (!%p417_p8, %s2746_s21), 15 }
  0x4b   : > { %s2749_s27 = sshll.u32 %s3940_s21, 3  ;;  %s2917_s28 = sshll.u32 %s3940_s21, 5 }
  0x4c   : > { %s3617_s8 = scalar_lea.vmem %s3922_s1, %s2749_s27  ;;  %s3622_s16 = scalar_lea.vmem %s3924_s3, %s2917_s28 }
  0x4d   : > { %v456_v1 = vld [vmem:[%s3617_s8] sm:$0xff]  ;;  %s2747_s11 = sshll.u32 %s3940_s21, 1  ;;  %v542_v2 = vld [vmem:[%s3622_s16 + $0x18] sm:$0xff]  ;;  %v541_v4 = vld [vmem:[%s3622_s16 + $0x10] sm:$0xff]  ;;  %s3649_s22 = scalar_lea.vmem %s3926_s5, %s2917_s28 }
  0x4e   : > { %3016 = vmatpush3.msra.mxu0 %v456_v1  ;;  %s3632_s13 = scalar_lea.vmem %s3921_s0, %s2747_s11  ;;  %3021 = vmatpush3.msra.mxu1 %v542_v2  ;;  %v540_v5 = vld [vmem:[%s3622_s16 + $0x8] sm:$0xff]  ;;  %v539_v6 = vld [vmem:[%s3622_s16] sm:$0xff]  ;;  %v628_v7 = vld [vmem:[%s3649_s22 + $0x18] sm:$0xff]  ;;  %s3703_s28 = scalar_lea.vmem %s3927_s6, %s3940_s21 }
  0x4f   : > { %v455_v3 = vld [vmem:[%s3632_s13] sm:$0x3]  ;;  %3022 = vmatprep.subr.mxu1 %v3411_v0  ;;  %3031 = vmatprep.subr.mxu0 %v3411_v0  ;;  %v627_v8 = vld [vmem:[%s3649_s22 + $0x10] sm:$0xff]  ;;  %v2767_v14 = vld [vmem:[%s3617_s8 + $0x8] sm:$0xff]  ;;  %s3733_s14 = scalar_lea.vmem %s3928_s7, %s2747_s11 }
  0x50   : > { %3018 = vmatmul.mubr.msk.f32.vlgmr.msra.gmra.mxu0 %vm464_vm1, %v455_v3  ;;  %3023 = vmatpush3.msra.mxu1 %v541_v4  ;;  %v2766_v15 = vld [vmem:[%s3632_s13 + $0x2] sm:$0x3]  ;;  %v626_v16 = vld [vmem:[%s3649_s22 + $0x8] sm:$0xff]  ;;  %v2774_v24 = vld [vmem:[%s3622_s16 + $0x38] sm:$0xff] }
  0x51   : > { %3039 = vmatprep.mubr.msk.f32.mxu0 %vm3412_vm0, %v3411_v0  ;;  %3024 = vmatprep.subr.mxu1 %v3411_v0  ;;  %v625_v17 = vld [vmem:[%s3649_s22] sm:$0xff]  ;;  %v2773_v27 = vld [vmem:[%s3622_s16 + $0x30] sm:$0xff]  ;;  %v2772_v29 = vld [vmem:[%s3622_s16 + $0x28] sm:$0xff] }
  0x52   : > { %3025 = vmatpush3.msra.mxu1 %v540_v5  ;;  %3032 = vmatpush3.msra.mxu0 %v628_v7  ;;  %v2771_v31 = vld [vmem:[%s3622_s16 + $0x20] sm:$0xff]  ;;  %v2788_v32 = vld [vmem:[%s3617_s8 + $0x10] sm:$0xff]  ;;  %v2781_v34 = vld [vmem:[%s3649_s22 + $0x38] sm:$0xff] }
  0x53   : > { %3026 = vmatprep.subr.mxu1 %v3411_v0  ;;  %3033 = vmatprep.subr.mxu0 %v3411_v0  ;;  %v2787_v33 = vld [vmem:[%s3632_s13 + $0x4] sm:$0x3]  ;;  %v2780_v35 = vld [vmem:[%s3649_s22 + $0x30] sm:$0xff]  ;;  %v2779_v36 = vld [vmem:[%s3649_s22 + $0x28] sm:$0xff] }
  0x54   : > { %3027 = vmatpush3.msra.mxu1 %v539_v6  ;;  %3034 = vmatpush3.msra.mxu0 %v627_v8  ;;  %v2778_v37 = vld [vmem:[%s3649_s22 + $0x20] sm:$0xff]  ;;  %v2795_v49 = vld [vmem:[%s3622_s16 + $0x58] sm:$0xff]  ;;  %v2794_v52 = vld [vmem:[%s3622_s16 + $0x50] sm:$0xff] }
  0x55   : > { %3042 = vmatprep.subr.mxu1 %v3411_v0  ;;  %3035 = vmatprep.subr.mxu0 %v3411_v0  ;;  %v2763_v38 = vld [vmem:[%s3703_s28] ss:$0 sm:$0xff]  ;;  %v2793_v54 = vld [vmem:[%s3622_s16 + $0x48] sm:$0xff]  ;;  %v2809_v59 = vld [vmem:[%s3617_s8 + $0x18] sm:$0xff] }
  0x56   : > { %3036 = vmatpush3.msra.mxu0 %v626_v16  ;;  %v2792_v56 = vld [vmem:[%s3622_s16 + $0x40] sm:$0xff]  ;;  %v2802_v62 = vld [vmem:[%s3649_s22 + $0x58] sm:$0xff]  ;;  %v2801_v63 = vld [vmem:[%s3649_s22 + $0x50] sm:$0xff] }
  0x57   : > { %3037 = vmatprep.subr.mxu0 %v3411_v0  ;;  %v2808_v60 = vld [vmem:[%s3632_s13 + $0x6] sm:$0x3]  ;;  %v2800_v1 = vld [vmem:[%s3649_s22 + $0x48] sm:$0xff]  ;;  %v2783_v3 = vld [vmem:[%s3703_s28 + $0x1] ss:$0 sm:$0xff] }
  0x58   : > { %3038 = vmatpush3.msra.mxu0 %v625_v17  ;;  %v2799_v2 = vld [vmem:[%s3649_s22 + $0x40] sm:$0xff]  ;;  %v2797_v8 = vld [vmem:[%s3596_s30 + $0x2] ss:$0 sm:$0xff] }
  0x59   : > { %3047 = vmatprep.subr.mxu0 %v3411_v0  ;;  %v2815_v17 = vld [vmem:[%s3622_s16 + $0x70] sm:$0xff] }
 0x110   : > { %v534_v10 = vpop.f32.mrf.mxu0 }
 0x111   : > { %v535_v11 = vadd.f32 %v2759_v9, %v534_v10 }
 0x112   : > { %v3019_v12 = vpop.f32.mrf.mxu0 }
 0x113   : > { %v538_v13 = vmax.f32 %v535_v11, 0.0  ;;  %v2811_v12 = vld [vmem:[%s3590_s24 + $0x3] ss:$0 sm:$0xff] }
 0x115   : > { %3029 = vmatmul.mubr.msk.f32.vlgmr.msra.gmra.mxu1 %vm550_vm2, %v538_v13 }
 0x116   : > { %3043 = vmatpush3.msra.mxu1 %v2767_v14  ;;  %3044 = vmatprep.mubr.msk.f32.mxu1 %vm3412_vm0, %v3411_v0  ;;  %v2816_v14 = vld [vmem:[%s3622_s16 + $0x78] sm:$0xff] }
 0x117   : > { %3058 = vmatprep.subr.mxu1 %v3411_v0 }
 0x119   : > { %3045 = vmatmul.mubr.msk.f32.vlgmr.msra.gmra.mxu1 %vm464_vm1, %v2766_v15 }
 0x11a   : > { %3066 = vmatprep.mubr.msk.f32.mxu1 %vm3412_vm0, %v3411_v0  ;;  %3059 = vmatpush3.msra.mxu1 %v2781_v34 }
 0x11b   : > { %3060 = vmatprep.subr.mxu1 %v3411_v0 }
 0x11c   : > { %3061 = vmatpush3.msra.mxu1 %v2780_v35 }
 0x11d   : > { %3062 = vmatprep.subr.mxu1 %v3411_v0 }
 0x11e   : > { %3063 = vmatpush3.msra.mxu1 %v2779_v36  ;;  %v2818_v36 = vld [vmem:[%s3596_s30 + $0x3] ss:$0 sm:$0xff] }
 0x11f   : > { %3064 = vmatprep.subr.mxu1 %v3411_v0 }
 0x120   : > { %3065 = vmatpush3.msra.mxu1 %v2778_v37 }
 0x121   : > { %3074 = vmatprep.subr.mxu1 %v3411_v0 }
 0x1d5   : > { %v620_v19 = vpop.f32.mrf.mxu1 }
 0x1d6   : > { %v621_v20 = vadd.f32 %v2761_v18, %v620_v19  ;;  %v2814_v19 = vld [vmem:[%s3622_s16 + $0x68] sm:$0xff] }
 0x1d7   : > { %v3030_v21 = vpop.f32.mrf.mxu1 }
 0x1d8   : > { %v624_v23 = vmax.f32 %v621_v20, 0.0  ;;  %v2813_v21 = vld [vmem:[%s3622_s16 + $0x60] sm:$0xff] }
 0x1d9   : > { %v798_v25 = vpop.f32.mrf.mxu1 }
 0x1da   : > { %3040 = vmatmul.mubr.msk.f32.vlgmr.msra.gmra.mxu0 %vm550_vm2, %v624_v23  ;;  %v799_v26 = vadd.f32 %v2769_v22, %v798_v25  ;;  %v2829_v25 = vld [vmem:[%s3632_s13 + $0x8] sm:$0x3] }
 0x1db   : > { %3048 = vmatpush3.msra.mxu0 %v2774_v24  ;;  %v3046_v28 = vpop.f32.mrf.mxu1  ;;  %3055 = vmatprep.mubr.msk.f32.mxu0 %vm3412_vm0, %v3411_v0  ;;  %v2830_v24 = vld [vmem:[%s3617_s8 + $0x20] sm:$0xff] }
 0x1dc   : > { %3049 = vmatprep.subr.mxu0 %v3411_v0  ;;  %v802_v30 = vmax.f32 %v799_v26, 0.0  ;;  %v2822_v28 = vld [vmem:[%s3649_s22 + $0x70] sm:$0xff] }
 0x1dd   : > { %3050 = vmatpush3.msra.mxu0 %v2773_v27  ;;  %v2823_v27 = vld [vmem:[%s3649_s22 + $0x78] sm:$0xff] }
 0x1de   : > { %3051 = vmatprep.subr.mxu0 %v3411_v0 }
 0x1df   : > { %3052 = vmatpush3.msra.mxu0 %v2772_v29  ;;  %v2821_v29 = vld [vmem:[%s3649_s22 + $0x68] sm:$0xff] }
 0x1e0   : > { %3053 = vmatprep.subr.mxu0 %v3411_v0 }
 0x1e1   : > { %3054 = vmatpush3.msra.mxu0 %v2771_v31  ;;  %v2804_v31 = vld [vmem:[%s3703_s28 + $0x2] ss:$0 sm:$0xff] }
 0x1e2   : > { %3056 = vmatmul.mubr.msk.f32.vlgmr.msra.gmra.mxu0 %vm550_vm2, %v802_v30  ;;  %3069 = vmatprep.subr.mxu0 %v3411_v0  ;;  %v2820_v30 = vld [vmem:[%s3649_s22 + $0x60] sm:$0xff] }
 0x1e3   : > { %3070 = vmatpush3.msra.mxu0 %v2788_v32  ;;  %3071 = vmatprep.mubr.msk.f32.mxu0 %vm3412_vm0, %v3411_v0 }
 0x1e4   : > { %3085 = vmatprep.subr.mxu0 %v3411_v0 }
 0x1e6   : > { %3072 = vmatmul.mubr.msk.f32.vlgmr.msra.gmra.mxu0 %vm464_vm1, %v2787_v33 }
 0x1e7   : > { %3093 = vmatprep.mubr.msk.f32.mxu0 %vm3412_vm0, %v3411_v0  ;;  %3086 = vmatpush3.msra.mxu0 %v2802_v62 }
 0x1e8   : > { %3087 = vmatprep.subr.mxu0 %v3411_v0 }
 0x1e9   : > { %3088 = vmatpush3.msra.mxu0 %v2801_v63 }
 0x1ea   : > { %3089 = vmatprep.subr.mxu0 %v3411_v0 }
 0x1eb   : > { %3090 = vmatpush3.msra.mxu0 %v2800_v1  ;;  %v2839_v1 = vld [vmem:[%s3596_s30 + $0x4] ss:$0 sm:$0xff] }
 0x1ec   : > { %3091 = vmatprep.subr.mxu0 %v3411_v0 }
 0x1ed   : > { %3092 = vmatpush3.msra.mxu0 %v2799_v2 }
 0x1ee   : > { %3101 = vmatprep.subr.mxu0 %v3411_v0 }
 0x29a   : > { %v705_v39 = vpop.f32.mrf.mxu0 }
 0x29b   : > { %v706_v40 = vadd.f32 %v2763_v38, %v705_v39 }
 0x29c   : > { %v3041_v41 = vpop.f32.mrf.mxu0 }
 0x29d   : > { %v2765_v42 = vmul.f32 -1.442695, %v706_v40  ;;  %v2832_v40 = vld [vmem:[%s3590_s24 + $0x4] ss:$0 sm:$0xff] }
 0x29f   : > { %3279 = vpow2.f32 %v2765_v42  ;;  %v2837_v42 = vld [vmem:[%s3622_s16 + $0x98] sm:$0xff] }
 0x2a2   : > { %v885_v44 = vpop.f32.mrf.mxu0 }
 0x2a3   : > { %v886_v45 = vadd.f32 %v2776_v43, %v885_v44 }
 0x2a4   : > { %v3057_v46 = vpop.f32.mrf.mxu0 }
 0x2a5   : > { %v889_v48 = vmax.f32 %v886_v45, 0.0  ;;  %v2836_v45 = vld [vmem:[%s3622_s16 + $0x90] sm:$0xff] }
 0x2a6   : > { %v1065_v50 = vpop.f32.mrf.mxu0 }
 0x2a7   : > { %3067 = vmatmul.mubr.msk.f32.vlgmr.msra.gmra.mxu1 %vm550_vm2, %v889_v48  ;;  %v1066_v51 = vadd.f32 %v2790_v47, %v1065_v50  ;;  %v2835_v47 = vld [vmem:[%s3622_s16 + $0x88] sm:$0xff] }
 0x2a8   : > { %3075 = vmatpush3.msra.mxu1 %v2795_v49  ;;  %v3073_v53 = vpop.f32.mrf.mxu0  ;;  %3082 = vmatprep.mubr.msk.f32.mxu1 %vm3412_vm0, %v3411_v0  ;;  %v2834_v49 = vld [vmem:[%s3622_s16 + $0x80] sm:$0xff] }
 0x2a9   : > { %3076 = vmatprep.subr.mxu1 %v3411_v0  ;;  %v1069_v55 = vmax.f32 %v1066_v51, 0.0  ;;  %v2850_v53 = vld [vmem:[%s3632_s13 + $0xa] sm:$0x3] }
 0x2aa   : > { %3077 = vmatpush3.msra.mxu1 %v2794_v52  ;;  %v2851_v52 = vld [vmem:[%s3617_s8 + $0x28] sm:$0xff] }
 0x2ab   : > { %3078 = vmatprep.subr.mxu1 %v3411_v0 }
 0x2ac   : > { %v3280_v57 = vpop.eup %3279  ;;  %3079 = vmatpush3.msra.mxu1 %v2793_v54 }
 0x2ad   : > { %v712_v58 = vadd.f32 1.0, %v3280_v57  ;;  %3080 = vmatprep.subr.mxu1 %v3411_v0  ;;  %v2842_v57 = vld [vmem:[%s3649_s22 + $0x88] sm:$0xff] }
 0x2ae   : > { %3081 = vmatpush3.msra.mxu1 %v2792_v56  ;;  %v2843_v56 = vld [vmem:[%s3649_s22 + $0x90] sm:$0xff] }
 0x2af   : > { %3281 = vrcp.f32 %v712_v58  ;;  %3083 = vmatmul.mubr.msk.f32.vlgmr.msra.gmra.mxu1 %vm550_vm2, %v1069_v55  ;;  %3096 = vmatprep.subr.mxu1 %v3411_v0  ;;  %v2844_v55 = vld [vmem:[%s3649_s22 + $0x98] sm:$0xff]  ;;  %v2841_v58 = vld [vmem:[%s3649_s22 + $0x80] sm:$0xff] }
 0x2b0   : > { %3097 = vmatpush3.msra.mxu1 %v2809_v59  ;;  %3098 = vmatprep.mubr.msk.f32.mxu1 %vm3412_vm0, %v3411_v0  ;;  %v2825_v59 = vld [vmem:[%s3703_s28 + $0x3] ss:$0 sm:$0xff] }
 0x2b1   : > { %3112 = vmatprep.subr.mxu1 %v3411_v0 }
 0x2b3   : > { %3099 = vmatmul.mubr.msk.f32.vlgmr.msra.gmra.mxu1 %vm464_vm1, %v2808_v60 }
 0x2b4   : > { %3120 = vmatprep.mubr.msk.f32.mxu1 %vm3412_vm0, %v3411_v0  ;;  %3113 = vmatpush3.msra.mxu1 %v2823_v27 }
 0x2b5   : > { %3114 = vmatprep.subr.mxu1 %v3411_v0 }
 0x2b6   : > { %3115 = vmatpush3.msra.mxu1 %v2822_v28 }
 0x2b7   : > { %3116 = vmatprep.subr.mxu1 %v3411_v0 }
 0x2b8   : > { %3117 = vmatpush3.msra.mxu1 %v2821_v29  ;;  %v2860_v29 = vld [vmem:[%s3596_s30 + $0x5] ss:$0 sm:$0xff] }
 0x2b9   : > { %3118 = vmatprep.subr.mxu1 %v3411_v0 }
 0x2ba   : > { %3119 = vmatpush3.msra.mxu1 %v2820_v30 }
 0x2bb   : > { %3128 = vmatprep.subr.mxu1 %v3411_v0 }
 0x2bc   : > { %v3282_v61 = vpop.eup %3281 }
 0x2bd   : > { %716 = vst.msk [vmem:[%s3733_s14] sm:$0x3] %vm715_vm3, %v3282_v61 }
 0x367   : > { %v972_v4 = vpop.f32.mrf.mxu1 }
 0x368   : > { %v973_v5 = vadd.f32 %v2783_v3, %v972_v4 }
 0x369   : > { %v3068_v6 = vpop.f32.mrf.mxu1 }
 0x36a   : > { %v2785_v7 = vmul.f32 -1.442695, %v973_v5  ;;  %v2853_v5 = vld [vmem:[%s3590_s24 + $0x5] ss:$0 sm:$0xff] }
 0x36c   : > { %3283 = vpow2.f32 %v2785_v7  ;;  %v2858_v7 = vld [vmem:[%s3622_s16 + $0xb8] sm:$0xff] }
 0x36f   : > { %v1152_v9 = vpop.f32.mrf.mxu1 }
 0x370   : > { %v1153_v10 = vadd.f32 %v2797_v8, %v1152_v9 }
 0x371   : > { %v3084_v11 = vpop.f32.mrf.mxu1 }
 0x372   : > { %v1156_v13 = vmax.f32 %v1153_v10, 0.0  ;;  %v2857_v10 = vld [vmem:[%s3622_s16 + $0xb0] sm:$0xff] }
 0x373   : > { %v1332_v15 = vpop.f32.mrf.mxu1 }
 0x374   : > { %3094 = vmatmul.mubr.msk.f32.vlgmr.msra.gmra.mxu0 %vm550_vm2, %v1156_v13  ;;  %v1333_v16 = vadd.f32 %v2811_v12, %v1332_v15  ;;  %v2856_v12 = vld [vmem:[%s3622_s16 + $0xa8] sm:$0xff] }
 0x375   : > { %3102 = vmatpush3.msra.mxu0 %v2816_v14  ;;  %v3100_v18 = vpop.f32.mrf.mxu1  ;;  %3109 = vmatprep.mubr.msk.f32.mxu0 %vm3412_vm0, %v3411_v0  ;;  %v2855_v14 = vld [vmem:[%s3622_s16 + $0xa0] sm:$0xff] }
 0x376   : > { %3103 = vmatprep.subr.mxu0 %v3411_v0  ;;  %v1336_v20 = vmax.f32 %v1333_v16, 0.0  ;;  %v2871_v18 = vld [vmem:[%s3632_s13 + $0xc] sm:$0x3] }
 0x377   : > { %3104 = vmatpush3.msra.mxu0 %v2815_v17  ;;  %v2872_v17 = vld [vmem:[%s3617_s8 + $0x30] sm:$0xff] }
 0x378   : > { %3105 = vmatprep.subr.mxu0 %v3411_v0 }
 0x379   : > { %v3284_v22 = vpop.eup %3283  ;;  %3106 = vmatpush3.msra.mxu0 %v2814_v19 }
 0x37a   : > { %v979_v23 = vadd.f32 1.0, %v3284_v22  ;;  %3107 = vmatprep.subr.mxu0 %v3411_v0  ;;  %v2863_v22 = vld [vmem:[%s3649_s22 + $0xa8] sm:$0xff] }
 0x37b   : > { %3108 = vmatpush3.msra.mxu0 %v2813_v21  ;;  %v2864_v21 = vld [vmem:[%s3649_s22 + $0xb0] sm:$0xff] }
 0x37c   : > { %3285 = vrcp.f32 %v979_v23  ;;  %3110 = vmatmul.mubr.msk.f32.vlgmr.msra.gmra.mxu0 %vm550_vm2, %v1336_v20  ;;  %3123 = vmatprep.subr.mxu0 %v3411_v0  ;;  %v2865_v20 = vld [vmem:[%s3649_s22 + $0xb8] sm:$0xff]  ;;  %v2862_v23 = vld [vmem:[%s3649_s22 + $0xa0] sm:$0xff] }
 0x37d   : > { %3124 = vmatpush3.msra.mxu0 %v2830_v24  ;;  %3125 = vmatprep.mubr.msk.f32.mxu0 %vm3412_vm0, %v3411_v0  ;;  %v2846_v24 = vld [vmem:[%s3703_s28 + $0x4] ss:$0 sm:$0xff] }
 0x37e   : > { %3139 = vmatprep.subr.mxu0 %v3411_v0 }
 0x380   : > { %3126 = vmatmul.mubr.msk.f32.vlgmr.msra.gmra.mxu0 %vm464_vm1, %v2829_v25 }
 0x381   : > { %3147 = vmatprep.mubr.msk.f32.mxu0 %vm3412_vm0, %v3411_v0  ;;  %3140 = vmatpush3.msra.mxu0 %v2844_v55 }
 0x382   : > { %3141 = vmatprep.subr.mxu0 %v3411_v0 }
 0x383   : > { %3142 = vmatpush3.msra.mxu0 %v2843_v56 }
 0x384   : > { %3143 = vmatprep.subr.mxu0 %v3411_v0 }
 0x385   : > { %3144 = vmatpush3.msra.mxu0 %v2842_v57  ;;  %v2881_v57 = vld [vmem:[%s3596_s30 + $0x6] ss:$0 sm:$0xff] }
 0x386   : > { %3145 = vmatprep.subr.mxu0 %v3411_v0 }
 0x387   : > { %3146 = vmatpush3.msra.mxu0 %v2841_v58 }
 0x388   : > { %3155 = vmatprep.subr.mxu0 %v3411_v0 }
 0x389   : > { %v3286_v26 = vpop.eup %3285 }
 0x38a   : > { %2786 = vst.msk [vmem:[%s3733_s14 + $0x2] sm:$0x3] %vm715_vm3, %v3286_v26 }
 0x434   : > { %v1239_v32 = vpop.f32.mrf.mxu0 }
 0x435   : > { %v1240_v33 = vadd.f32 %v2804_v31, %v1239_v32 }
 0x436   : > { %v3095_v34 = vpop.f32.mrf.mxu0 }
 0x437   : > { %v2806_v35 = vmul.f32 -1.442695, %v1240_v33  ;;  %v2874_v33 = vld [vmem:[%s3590_s24 + $0x6] ss:$0 sm:$0xff] }
 0x439   : > { %3287 = vpow2.f32 %v2806_v35  ;;  %v2879_v35 = vld [vmem:[%s3622_s16 + $0xd8] sm:$0xff] }
 0x43c   : > { %v1419_v37 = vpop.f32.mrf.mxu0 }
 0x43d   : > { %v1420_v38 = vadd.f32 %v2818_v36, %v1419_v37 }
 0x43e   : > { %v3111_v39 = vpop.f32.mrf.mxu0 }
 0x43f   : > { %v1423_v41 = vmax.f32 %v1420_v38, 0.0  ;;  %v2878_v38 = vld [vmem:[%s3622_s16 + $0xd0] sm:$0xff] }
 0x440   : > { %v1599_v43 = vpop.f32.mrf.mxu0 }
 0x441   : > { %3121 = vmatmul.mubr.msk.f32.vlgmr.msra.gmra.mxu1 %vm550_vm2, %v1423_v41  ;;  %v1600_v44 = vadd.f32 %v2832_v40, %v1599_v43  ;;  %v2877_v40 = vld [vmem:[%s3622_s16 + $0xc8] sm:$0xff] }
 0x442   : > { %3129 = vmatpush3.msra.mxu1 %v2837_v42  ;;  %v3127_v46 = vpop.f32.mrf.mxu0  ;;  %3136 = vmatprep.mubr.msk.f32.mxu1 %vm3412_vm0, %v3411_v0  ;;  %v2876_v42 = vld [vmem:[%s3622_s16 + $0xc0] sm:$0xff] }
 0x443   : > { %3130 = vmatprep.subr.mxu1 %v3411_v0  ;;  %v1603_v48 = vmax.f32 %v1600_v44, 0.0  ;;  %v2892_v46 = vld [vmem:[%s3632_s13 + $0xe] sm:$0x3] }
 0x444   : > { %3131 = vmatpush3.msra.mxu1 %v2836_v45  ;;  %v2893_v45 = vld [vmem:[%s3617_s8 + $0x38] sm:$0xff] }
 0x445   : > { %3132 = vmatprep.subr.mxu1 %v3411_v0 }
 0x446   : > { %v3288_v50 = vpop.eup %3287  ;;  %3133 = vmatpush3.msra.mxu1 %v2835_v47 }
 0x447   : > { %v1246_v51 = vadd.f32 1.0, %v3288_v50  ;;  %3134 = vmatprep.subr.mxu1 %v3411_v0  ;;  %v2884_v50 = vld [vmem:[%s3649_s22 + $0xc8] sm:$0xff] }
 0x448   : > { %3135 = vmatpush3.msra.mxu1 %v2834_v49  ;;  %v2885_v49 = vld [vmem:[%s3649_s22 + $0xd0] sm:$0xff] }
 0x449   : > { %3289 = vrcp.f32 %v1246_v51  ;;  %3137 = vmatmul.mubr.msk.f32.vlgmr.msra.gmra.mxu1 %vm550_vm2, %v1603_v48  ;;  %3150 = vmatprep.subr.mxu1 %v3411_v0  ;;  %v2886_v48 = vld [vmem:[%s3649_s22 + $0xd8] sm:$0xff]  ;;  %v2883_v51 = vld [vmem:[%s3649_s22 + $0xc0] sm:$0xff] }
 0x44a   : > { %3151 = vmatpush3.msra.mxu1 %v2851_v52  ;;  %3152 = vmatprep.mubr.msk.f32.mxu1 %vm3412_vm0, %v3411_v0  ;;  %v2867_v52 = vld [vmem:[%s3703_s28 + $0x5] ss:$0 sm:$0xff] }
 0x44b   : > { %3166 = vmatprep.subr.mxu1 %v3411_v0 }
 0x44d   : > { %3153 = vmatmul.mubr.msk.f32.vlgmr.msra.gmra.mxu1 %vm464_vm1, %v2850_v53 }
 0x44e   : > { %3174 = vmatprep.mubr.msk.f32.mxu1 %vm3412_vm0, %v3411_v0  ;;  %3167 = vmatpush3.msra.mxu1 %v2865_v20  ;;  %v2902_v20 = vld [vmem:[%s3596_s30 + $0x7] ss:$0 sm:$0xff] }
 0x44f   : > { %3168 = vmatprep.subr.mxu1 %v3411_v0 }
 0x450   : > { %3169 = vmatpush3.msra.mxu1 %v2864_v21 }
 0x451   : > { %3170 = vmatprep.subr.mxu1 %v3411_v0 }
 0x452   : > { %3171 = vmatpush3.msra.mxu1 %v2863_v22 }
 0x453   : > { %3172 = vmatprep.subr.mxu1 %v3411_v0 }
 0x454   : > { %3173 = vmatpush3.msra.mxu1 %v2862_v23 }
 0x455   : > { %3182 = vmatprep.subr.mxu1 %v3411_v0 }
 0x456   : > { %v3290_v54 = vpop.eup %3289 }
 0x457   : > { %2807 = vst.msk [vmem:[%s3733_s14 + $0x4] sm:$0x3] %vm715_vm3, %v3290_v54 }
 0x501   : > { %v1506_v60 = vpop.f32.mrf.mxu1 }
 0x502   : > { %v1507_v61 = vadd.f32 %v2825_v59, %v1506_v60 }
 0x503   : > { %v3122_v62 = vpop.f32.mrf.mxu1 }
 0x504   : > { %v2827_v63 = vmul.f32 -1.442695, %v1507_v61  ;;  %v2895_v61 = vld [vmem:[%s3590_s24 + $0x7] ss:$0 sm:$0xff] }
 0x506   : > { %3291 = vpow2.f32 %v2827_v63  ;;  %v2900_v63 = vld [vmem:[%s3622_s16 + $0xf8] sm:$0xff] }
 0x509   : > { %v1686_v2 = vpop.f32.mrf.mxu1 }
 0x50a   : > { %v1687_v3 = vadd.f32 %v2839_v1, %v1686_v2 }
 0x50b   : > { %v3138_v4 = vpop.f32.mrf.mxu1 }
 0x50c   : > { %v1690_v6 = vmax.f32 %v1687_v3, 0.0  ;;  %v2899_v3 = vld [vmem:[%s3622_s16 + $0xf0] sm:$0xff] }
 0x50d   : > { %v1866_v8 = vpop.f32.mrf.mxu1 }
 0x50e   : > { %3148 = vmatmul.mubr.msk.f32.vlgmr.msra.gmra.mxu0 %vm550_vm2, %v1690_v6  ;;  %v1867_v9 = vadd.f32 %v2853_v5, %v1866_v8  ;;  %v2898_v5 = vld [vmem:[%s3622_s16 + $0xe8] sm:$0xff] }
 0x50f   : > { %3156 = vmatpush3.msra.mxu0 %v2858_v7  ;;  %v3154_v11 = vpop.f32.mrf.mxu1  ;;  %3163 = vmatprep.mubr.msk.f32.mxu0 %vm3412_vm0, %v3411_v0  ;;  %v2897_v7 = vld [vmem:[%s3622_s16 + $0xe0] sm:$0xff] }
 0x510   : > { %3157 = vmatprep.subr.mxu0 %v3411_v0  ;;  %v1870_v13 = vmax.f32 %v1867_v9, 0.0  ;;  %v2907_v11 = vld [vmem:[%s3649_s22 + $0xf8] sm:$0xff] }
 0x511   : > { %3158 = vmatpush3.msra.mxu0 %v2857_v10 }
 0x512   : > { %3159 = vmatprep.subr.mxu0 %v3411_v0 }
 0x513   : > { %v3292_v15 = vpop.eup %3291  ;;  %3160 = vmatpush3.msra.mxu0 %v2856_v12  ;;  %v2906_v12 = vld [vmem:[%s3649_s22 + $0xf0] sm:$0xff] }
 0x514   : > { %v1513_v16 = vadd.f32 1.0, %v3292_v15  ;;  %3161 = vmatprep.subr.mxu0 %v3411_v0  ;;  %v2888_v15 = vld [vmem:[%s3703_s28 + $0x6] ss:$0 sm:$0xff] }
 0x515   : > { %3162 = vmatpush3.msra.mxu0 %v2855_v14  ;;  %v2904_v14 = vld [vmem:[%s3649_s22 + $0xe0] sm:$0xff] }
 0x516   : > { %3293 = vrcp.f32 %v1513_v16  ;;  %3164 = vmatmul.mubr.msk.f32.vlgmr.msra.gmra.mxu0 %vm550_vm2, %v1870_v13  ;;  %3177 = vmatprep.subr.mxu0 %v3411_v0  ;;  %v2905_v13 = vld [vmem:[%s3649_s22 + $0xe8] sm:$0xff] }
 0x517   : > { %3178 = vmatpush3.msra.mxu0 %v2872_v17  ;;  %3179 = vmatprep.mubr.msk.f32.mxu0 %vm3412_vm0, %v3411_v0 }
 0x518   : > { %3193 = vmatprep.subr.mxu0 %v3411_v0 }
 0x51a   : > { %3180 = vmatmul.mubr.msk.f32.vlgmr.msra.gmra.mxu0 %vm464_vm1, %v2871_v18 }
 0x51b   : > { %3201 = vmatprep.mubr.msk.f32.mxu0 %vm3412_vm0, %v3411_v0  ;;  %3194 = vmatpush3.msra.mxu0 %v2886_v48 }
 0x51c   : > { %3195 = vmatprep.subr.mxu0 %v3411_v0 }
 0x51d   : > { %3196 = vmatpush3.msra.mxu0 %v2885_v49 }
 0x51e   : > { %3197 = vmatprep.subr.mxu0 %v3411_v0 }
 0x51f   : > { %3198 = vmatpush3.msra.mxu0 %v2884_v50 }
 0x520   : > { %3199 = vmatprep.subr.mxu0 %v3411_v0 }
 0x521   : > { %3200 = vmatpush3.msra.mxu0 %v2883_v51 }
 0x522   : > { %3209 = vmatprep.subr.mxu0 %v3411_v0 }
 0x523   : > { %v3294_v19 = vpop.eup %3293 }
 0x524   : > { %2828 = vst.msk [vmem:[%s3733_s14 + $0x6] sm:$0x3] %vm715_vm3, %v3294_v19 }
 0x5ce   : > { %v1773_v25 = vpop.f32.mrf.mxu0 }
 0x5cf   : > { %v1774_v26 = vadd.f32 %v2846_v24, %v1773_v25 }
 0x5d0   : > { %v3149_v27 = vpop.f32.mrf.mxu0 }
 0x5d1   : > { %v2848_v28 = vmul.f32 -1.442695, %v1774_v26  ;;  %v2909_v27 = vld [vmem:[%s3703_s28 + $0x7] ss:$0 sm:$0xff] }
 0x5d3   : > { %3295 = vpow2.f32 %v2848_v28 }
 0x5d6   : > { %v1953_v30 = vpop.f32.mrf.mxu0 }
 0x5d7   : > { %v1954_v31 = vadd.f32 %v2860_v29, %v1953_v30 }
 0x5d8   : > { %v3165_v32 = vpop.f32.mrf.mxu0 }
 0x5d9   : > { %v1957_v34 = vmax.f32 %v1954_v31, 0.0 }
 0x5da   : > { %v2133_v36 = vpop.f32.mrf.mxu0 }
 0x5db   : > { %3175 = vmatmul.mubr.msk.f32.vlgmr.msra.gmra.mxu1 %vm550_vm2, %v1957_v34  ;;  %v2134_v37 = vadd.f32 %v2874_v33, %v2133_v36 }
 0x5dc   : > { %3183 = vmatpush3.msra.mxu1 %v2879_v35  ;;  %v3181_v39 = vpop.f32.mrf.mxu0  ;;  %3190 = vmatprep.mubr.msk.f32.mxu1 %vm3412_vm0, %v3411_v0 }
 0x5dd   : > { %3184 = vmatprep.subr.mxu1 %v3411_v0  ;;  %v2137_v41 = vmax.f32 %v2134_v37, 0.0 }
 0x5de   : > { %3185 = vmatpush3.msra.mxu1 %v2878_v38 }
 0x5df   : > { %3186 = vmatprep.subr.mxu1 %v3411_v0 }
 0x5e0   : > { %v3296_v43 = vpop.eup %3295  ;;  %3187 = vmatpush3.msra.mxu1 %v2877_v40 }
 0x5e1   : > { %v1780_v44 = vadd.f32 1.0, %v3296_v43  ;;  %3188 = vmatprep.subr.mxu1 %v3411_v0 }
 0x5e2   : > { %3189 = vmatpush3.msra.mxu1 %v2876_v42 }
 0x5e3   : > { %3297 = vrcp.f32 %v1780_v44  ;;  %3191 = vmatmul.mubr.msk.f32.vlgmr.msra.gmra.mxu1 %vm550_vm2, %v2137_v41  ;;  %3204 = vmatprep.subr.mxu1 %v3411_v0 }
 0x5e4   : > { %3205 = vmatpush3.msra.mxu1 %v2893_v45  ;;  %3206 = vmatprep.mubr.msk.f32.mxu1 %vm3412_vm0, %v3411_v0 }
 0x5e5   : > { %3220 = vmatprep.subr.mxu1 %v3411_v0 }
 0x5e7   : > { %3207 = vmatmul.mubr.msk.f32.vlgmr.msra.gmra.mxu1 %vm464_vm1, %v2892_v46 }
 0x5e8   : > { %3228 = vmatprep.mubr.msk.f32.mxu1 %vm3412_vm0, %v3411_v0  ;;  %3221 = vmatpush3.msra.mxu1 %v2907_v11 }
 0x5e9   : > { %3222 = vmatprep.subr.mxu1 %v3411_v0 }
 0x5ea   : > { %3223 = vmatpush3.msra.mxu1 %v2906_v12 }
 0x5eb   : > { %3224 = vmatprep.subr.mxu1 %v3411_v0 }
 0x5ec   : > { %3225 = vmatpush3.msra.mxu1 %v2905_v13 }
 0x5ed   : > { %3226 = vmatprep.subr.mxu1 %v3411_v0 }
 0x5ee   : > { %3227 = vmatpush3.msra.mxu1 %v2904_v14 }
 0x5f0   : > { %v3298_v47 = vpop.eup %3297 }
 0x5f1   : > { %2849 = vst.msk [vmem:[%s3733_s14 + $0x8] sm:$0x3] %vm715_vm3, %v3298_v47 }
 0x69b   : > { %v2040_v53 = vpop.f32.mrf.mxu1 }
 0x69c   : > { %v2041_v54 = vadd.f32 %v2867_v52, %v2040_v53 }
 0x69d   : > { %v3176_v55 = vpop.f32.mrf.mxu1 }
 0x69e   : > { %v2869_v56 = vmul.f32 -1.442695, %v2041_v54 }
 0x6a0   : > { %3299 = vpow2.f32 %v2869_v56 }
 0x6a3   : > { %v2220_v58 = vpop.f32.mrf.mxu1 }
 0x6a4   : > { %v2221_v59 = vadd.f32 %v2881_v57, %v2220_v58 }
 0x6a5   : > { %v3192_v60 = vpop.f32.mrf.mxu1 }
 0x6a6   : > { %v2224_v62 = vmax.f32 %v2221_v59, 0.0 }
 0x6a7   : > { %v2400_v1 = vpop.f32.mrf.mxu1 }
 0x6a8   : > { %3202 = vmatmul.mubr.msk.f32.vlgmr.msra.gmra.mxu0 %vm550_vm2, %v2224_v62  ;;  %v2401_v2 = vadd.f32 %v2895_v61, %v2400_v1 }
 0x6a9   : > { %3210 = vmatpush3.msra.mxu0 %v2900_v63  ;;  %v3208_v4 = vpop.f32.mrf.mxu1  ;;  %3217 = vmatprep.mubr.msk.f32.mxu0 %vm3412_vm0, %v3411_v0 }
 0x6aa   : > { %3211 = vmatprep.subr.mxu0 %v3411_v0  ;;  %v2404_v6 = vmax.f32 %v2401_v2, 0.0 }
 0x6ab   : > { %3212 = vmatpush3.msra.mxu0 %v2899_v3 }
 0x6ac   : > { %3213 = vmatprep.subr.mxu0 %v3411_v0 }
 0x6ad   : > { %v3300_v8 = vpop.eup %3299  ;;  %3214 = vmatpush3.msra.mxu0 %v2898_v5 }
 0x6ae   : > { %v2047_v9 = vadd.f32 1.0, %v3300_v8  ;;  %3215 = vmatprep.subr.mxu0 %v3411_v0 }
 0x6af   : > { %3216 = vmatpush3.msra.mxu0 %v2897_v7 }
 0x6b0   : > { %3301 = vrcp.f32 %v2047_v9  ;;  %3218 = vmatmul.mubr.msk.f32.vlgmr.msra.gmra.mxu0 %vm550_vm2, %v2404_v6 }
 0x6bd   : > { %v3302_v10 = vpop.eup %3301 }
 0x6be   : > { %2870 = vst.msk [vmem:[%s3733_s14 + $0xa] sm:$0x3] %vm715_vm3, %v3302_v10 }
 0x768   : > { %v2307_v16 = vpop.f32.mrf.mxu0 }
 0x769   : > { %v2308_v17 = vadd.f32 %v2888_v15, %v2307_v16 }
 0x76a   : > { %v3203_v18 = vpop.f32.mrf.mxu0 }
 0x76b   : > { %v2890_v19 = vmul.f32 -1.442695, %v2308_v17 }
 0x76d   : > { %3303 = vpow2.f32 %v2890_v19 }
 0x770   : > { %v2487_v21 = vpop.f32.mrf.mxu0 }
 0x771   : > { %v2488_v22 = vadd.f32 %v2902_v20, %v2487_v21 }
 0x772   : > { %v3219_v23 = vpop.f32.mrf.mxu0 }
 0x773   : > { %v2491_v24 = vmax.f32 %v2488_v22, 0.0 }
 0x775   : > { %3229 = vmatmul.mubr.msk.f32.vlgmr.msra.gmra.mxu1 %vm550_vm2, %v2491_v24 }
 0x77a   : > { %v3304_v25 = vpop.eup %3303 }
 0x77b   : > { %v2314_v0 = vadd.f32 1.0, %v3304_v25 }
 0x77d   : > { %3305 = vrcp.f32 %v2314_v0 }
 0x78a   : > { %v3306_v26 = vpop.eup %3305 }
 0x78b   : > { %2891 = vst.msk [vmem:[%s3733_s14 + $0xc] sm:$0x3] %vm715_vm3, %v3306_v26 }
 0x835   : > { %v2574_v28 = vpop.f32.mrf.mxu1 }
 0x836   : > { %v2575_v29 = vadd.f32 %v2909_v27, %v2574_v28 }
 0x837   : > { %v3230_v30 = vpop.f32.mrf.mxu1 }
 0x838   : > { %v2911_v31 = vmul.f32 -1.442695, %v2575_v29 }
 0x83a   : > { %3307 = vpow2.f32 %v2911_v31 }
 0x847   : > { %v3308_v32 = vpop.eup %3307 }
 0x848   : > { %v2581_v33 = vadd.f32 1.0, %v3308_v32 }
 0x84a   : > { %3309 = vrcp.f32 %v2581_v33 }
 0x857   : > { %v3310_v34 = vpop.eup %3309 }
 0x858   : > { %2912 = vst.msk [vmem:[%s3733_s14 + $0xe] sm:$0x3] %vm715_vm3, %v3310_v34 }
 0x859 PF: > { %p20_p11 = scmp.ge.s32.totalorder %s3473_s29, 4   ;;  %s3935_s24 = smov %s3397_s25 }
 0x85a   : > { %s3936_s25 = smov %s3401_s26  ;;  %s3937_s26 = smov %s3483_s9 }
 0x85b   : > { %s3938_s27 = smov %s3473_s29  ;;  %22 = sbr.rel (!%p20_p11) target bundleno = 5 (0x5), region = 172 }
 0x860   :  { %2608 = vsyncpa [#allocation3], 1 }
 0x861   :  { %2610 = vsyncpa [#allocation3 + $0x1], 1 }
 0x862   :  { %2611 = vsyncpa [#allocation5], 1 }
 0x863   :  { %2613 = vsyncpa [#allocation5 + $0x1], 1 }

</bundles_post_ra>
